<compile_context>
chip_gen: v7x
topology: tpu7x:2x2x1
jax: 0.10.0
libtpu: 0.0.40
codegen_flags: <defaults>
</compile_context>

<pallas_src>
import functools
import math

import jax
import jax.numpy as jnp
from jax.experimental import pallas as pl
from jax.experimental.pallas import tpu as pltpu


# ---------------------------------------------------------------------------
# Fused MHA kernel: one grid step == B batch elements, all heads.
# ---------------------------------------------------------------------------
def _fused_mha_kernel(xq_ref, xk_ref, xv_ref, w_in_ref, wo_ref, b_ref, out_ref,
                      *, num_heads, q_len, kv_len, batch_per_step):
    f32 = jnp.float32
    E = w_in_ref.shape[0]
    d = E // num_heads
    cdt = xq_ref.dtype                      # bf16: native MXU operand dtype

    # ---- in-projections: all B*L (resp. B*S) rows at once, f32 accumulation ----
    # w_in_ref = [Wq^T*scale | Wk^T | Wv^T] (E, 3E); b_ref = [bq*scale|bk|bv|bo] (1, 4E).
    # Column slices are 128-lane aligned (multiples of E), so they are cheap.
    q_all = (jnp.dot(xq_ref[...], w_in_ref[:, 0:E],
                     preferred_element_type=f32) + b_ref[:, 0:E]).astype(cdt)
    k_all = (jnp.dot(xk_ref[...], w_in_ref[:, E:2 * E],
                     preferred_element_type=f32) + b_ref[:, E:2 * E]).astype(cdt)
    v_all = (jnp.dot(xv_ref[...], w_in_ref[:, 2 * E:3 * E],
                     preferred_element_type=f32) + b_ref[:, 2 * E:3 * E]).astype(cdt)
    bo = b_ref[:, 3 * E:4 * E]              # (1, E) f32

    L, S = q_len, kv_len
    for bi in range(batch_per_step):        # static unroll: B and H are small here
        qb = q_all[bi * L:(bi + 1) * L, :]  # (L, E) sublane slice (rows are batch-major)
        kb = k_all[bi * S:(bi + 1) * S, :]  # (S, E)
        vb = v_all[bi * S:(bi + 1) * S, :]  # (S, E)

        acc = jnp.zeros((L, E), f32)        # merged-head out-projection accumulator
        for h in range(num_heads):
            sl = slice(h * d, (h + 1) * d)
            qh, kh, vh = qb[:, sl], kb[:, sl], vb[:, sl]     # (L,d)/(S,d) bf16

            # scores (L, S): contract the head dim of both operands (no transpose).
            s = jax.lax.dot_general(qh, kh, (((1,), (1,)), ((), ())),
                                    preferred_element_type=f32)
            # numerically stable softmax along keys, all math in f32
            m = jnp.max(s, axis=-1, keepdims=True)
            p = jnp.exp(s - m)
            p = p * (1.0 / jnp.sum(p, axis=-1, keepdims=True))

            ctx = jnp.dot(p.astype(cdt), vh, preferred_element_type=f32)  # (L, d)
            # fold this head straight into the out-projection (no lane-axis concat)
            acc = acc + jnp.dot(ctx.astype(cdt), wo_ref[h],
                                preferred_element_type=f32)
        out_ref[bi * L:(bi + 1) * L, :] = (acc + bo).astype(out_ref.dtype)


# ---------------------------------------------------------------------------
# Wrapper: one fused pallas_call for the whole MultiheadAttention forward.
# ---------------------------------------------------------------------------
def multi_head_cross_attention(params, query, key, value, num_heads,
                               batch_block=None):
    """Equivalent of nn.MultiheadAttention(embed_dim, num_heads)(q, k, v)[0]."""
    L, N, E = query.shape
    S = key.shape[0]
    assert E % num_heads == 0, "embed_dim must be divisible by num_heads"
    d = E // num_heads
    scale = 1.0 / math.sqrt(d)
    cdt = jnp.bfloat16                       # MXU operand dtype (f32 accumulation)

    w_in = params["in_proj_weight"]          # (3E, E) rows = [Wq; Wk; Wv]
    b_in = params["in_proj_bias"]            # (3E,)
    w_out = params["out_proj_weight"]        # (E, E)
    b_out = params["out_proj_bias"]          # (E,)

    # One-time weight prep (tiny XLA ops on E x E params):
    #   - pre-transpose so the kernel feeds the MXU directly,
    #   - fold the 1/sqrt(d) softmax scale into Wq^T / bq,
    #   - pack the 3 in-proj weights / 4 biases into single operands,
    #   - reshape Wo^T to (H, d, E) so the head loop never lane-slices a weight,
    #   - cast weights to bf16 once.
    wq_t = (w_in[:E] * scale).T
    wk_t = w_in[E:2 * E].T
    wv_t = w_in[2 * E:].T
    w_in_t = jnp.concatenate([wq_t, wk_t, wv_t], axis=1).astype(cdt)   # (E, 3E)
    wo_t = w_out.T.reshape(num_heads, d, E).astype(cdt)                # (H, d, E)
    bias = jnp.concatenate([b_in[:E] * scale, b_in[E:2 * E], b_in[2 * E:], b_out]
                           ).reshape(1, 4 * E).astype(jnp.float32)     # (1, 4E)

    # Batch-major activation layout: batch n owns contiguous row block [n*T,(n+1)*T),
    # so one grid step projects all B*T rows at once; bf16 halves the DMA bytes.
    xq = query.transpose(1, 0, 2).reshape(N * L, E).astype(cdt)
    xk = key.transpose(1, 0, 2).reshape(N * S, E).astype(cdt)
    xv = value.transpose(1, 0, 2).reshape(N * S, E).astype(cdt)

    # Batch elements per grid step: collapse small problems into a single step,
    # otherwise pick a divisor of N keeping a few-thousand-row slab per step
    # (grid >= 2 also restores pipelining / megacore split on larger batches).
    if batch_block is None:
        batch_block = N
        if N * max(L, S) > 2048:
            for b in range(N - 1, 0, -1):
                if (N % b == 0 and b * max(L, S) <= 2048
                        and (b * L) % 8 == 0 and (b * S) % 8 == 0):
                    batch_block = b
                    break
    B = batch_block
    assert N % B == 0, "batch_block must divide the batch size"
    if B < N:
        assert (B * L) % 8 == 0 and (B * S) % 8 == 0, (
            "row blocks must be sublane (8) aligned when tiling the batch")

    # VMEM budget from actual block sizes (double-buffered operands) + f32 temps.
    out_itemsize = query.dtype.itemsize
    in_block_bytes = (B * L * E + 2 * B * S * E) * 2            # bf16 activations
    w_bytes = (3 * E * E + E * E) * 2 + 4 * E * 4               # packed weights+bias
    out_block_bytes = B * L * E * out_itemsize
    interm_bytes = B * (L + 2 * S) * E * 6 + L * S * 16 + L * E * 8
    vmem_limit = (2 * (in_block_bytes + out_block_bytes) + 2 * w_bytes
                  + interm_bytes + (8 << 20))
    vmem_limit = int(min(60 << 20, max(24 << 20, vmem_limit)))

    kernel = functools.partial(_fused_mha_kernel, num_heads=num_heads,
                               q_len=L, kv_len=S, batch_per_step=B)

    batch_blk = lambda i: (i, 0)             # row block for this step's batches
    const2 = lambda i: (0, 0)                # weights / biases resident across grid
    const3 = lambda i: (0, 0, 0)

    out = pl.pallas_call(
        kernel,
        out_shape=jax.ShapeDtypeStruct((N * L, E), query.dtype),
        grid_spec=pltpu.PrefetchScalarGridSpec(
            num_scalar_prefetch=0,
            grid=(N // B,),
            in_specs=[
                pl.BlockSpec((B * L, E), batch_blk),        # query rows (bf16)
                pl.BlockSpec((B * S, E), batch_blk),        # key rows
                pl.BlockSpec((B * S, E), batch_blk),        # value rows
                pl.BlockSpec((E, 3 * E), const2),           # packed [Wq|Wk|Wv]^T
                pl.BlockSpec((num_heads, d, E), const3),    # Wo^T as (H, d, E)
                pl.BlockSpec((1, 4 * E), const2),           # packed biases
            ],
            out_specs=pl.BlockSpec((B * L, E), batch_blk),
        ),
        compiler_params=pltpu.CompilerParams(
            dimension_semantics=("parallel",),              # megacore over batch blocks
            vmem_limit_bytes=vmem_limit,
        ),
    )(xq, xk, xv, w_in_t, wo_t, bias)

    return out.reshape(N, L, E).transpose(1, 0, 2)


# ---------------------------------------------------------------------------
# Pure-JAX f32 reference (mirrors torch.nn.MultiheadAttention forward).
# ---------------------------------------------------------------------------
def reference_mha(params, query, key, value, num_heads):
    L, N, E = query.shape
    S = key.shape[0]
    H = num_heads
    d = E // H
    scale = 1.0 / math.sqrt(d)

    w_in, b_in = params["in_proj_weight"], params["in_proj_bias"]
    w_out, b_out = params["out_proj_weight"], params["out_proj_bias"]
    wq, wk, wv = w_in[:E], w_in[E:2 * E], w_in[2 * E:]
    bq, bk, bv = b_in[:E], b_in[E:2 * E], b_in[2 * E:]

    q = query @ wq.T + bq
    k = key @ wk.T + bk
    v = value @ wv.T + bv

    qh = q.reshape(L, N, H, d).transpose(1, 2, 0, 3).reshape(N * H, L, d)
    kh = k.reshape(S, N, H, d).transpose(1, 2, 0, 3).reshape(N * H, S, d)
    vh = v.reshape(S, N, H, d).transpose(1, 2, 0, 3).reshape(N * H, S, d)

    s = jnp.einsum("bld,bsd->bls", qh, kh) * scale
    p = jax.nn.softmax(s, axis=-1)
    oh = jnp.einsum("bls,bsd->bld", p, vh)

    o = oh.reshape(N, H, L, d).transpose(2, 0, 1, 3).reshape(L, N, E)
    return o @ w_out.T + b_out


# ---------------------------------------------------------------------------
if __name__ == "__main__":
    embed_dim = 128     # lane-aligned output slabs (E multiple of 128)
    num_heads = 4       # head_dim = 32
    L = 8               # target (query) sequence length
    S = 16              # source (key/value) sequence length
    N = 2               # batch

    root = jax.random.PRNGKey(0)
    kw, kb, kow, kob, kq, kk, kv = jax.random.split(root, 7)

    params = {
        "in_proj_weight": jax.random.normal(kw, (3 * embed_dim, embed_dim),
                                            jnp.float32) * 0.05,
        "in_proj_bias": jax.random.normal(kb, (3 * embed_dim,),
                                          jnp.float32) * 0.05,
        "out_proj_weight": jax.random.normal(kow, (embed_dim, embed_dim),
                                             jnp.float32) * 0.05,
        "out_proj_bias": jax.random.normal(kob, (embed_dim,),
                                           jnp.float32) * 0.05,
    }

    query = jax.random.normal(kq, (L, N, embed_dim), jnp.float32)
    key = jax.random.normal(kk, (S, N, embed_dim), jnp.float32)
    value = jax.random.normal(kv, (S, N, embed_dim), jnp.float32)

    out = multi_head_cross_attention(params, query, key, value, num_heads)
    out = jax.block_until_ready(out)

    ref = reference_mha(params, query, key, value, num_heads)
    assert out.shape == (L, N, embed_dim)
    max_err = float(jnp.max(jnp.abs(out - ref)))
    # Tolerance accounts for bf16 MXU operands (f32 accumulation) vs the f32 reference.
    assert jnp.allclose(out, ref, atol=3e-2, rtol=3e-2), (
        f"mismatch vs reference (max abs err {max_err})")

    print("KERNEL_OK")
</pallas_src>

<mosaic_0001>
module attributes {stable_mosaic.version = 11 : i64} {
  func.func @_fused_mha_kernel(%arg0: i32, %arg1: memref<16x128xbf16, #tpu.memory_space<vmem>>, %arg2: memref<32x128xbf16, #tpu.memory_space<vmem>>, %arg3: memref<32x128xbf16, #tpu.memory_space<vmem>>, %arg4: memref<128x384xbf16, #tpu.memory_space<vmem>>, %arg5: memref<4x32x128xbf16, #tpu.memory_space<vmem>>, %arg6: memref<1x512xf32, #tpu.memory_space<vmem>>, %arg7: memref<16x128xf32, #tpu.memory_space<vmem>>) attributes {dimension_semantics = [#tpu.dimension_semantics<parallel>], iteration_bounds = array<i64: 1>, scalar_prefetch = 0 : i64, scratch_operands = 0 : i64, tpu.core_type = #tpu.core_type<tc>, window_params = [{transform_indices = @transform_0, window_bounds = array<i64: 16, 128>}, {transform_indices = @transform_1, window_bounds = array<i64: 32, 128>}, {transform_indices = @transform_2, window_bounds = array<i64: 32, 128>}, {pipeline_mode = #tpu.pipeline_mode<synchronous>, transform_indices = @transform_3, window_bounds = array<i64: 128, 384>}, {pipeline_mode = #tpu.pipeline_mode<synchronous>, transform_indices = @transform_4, window_bounds = array<i64: 4, 32, 128>}, {pipeline_mode = #tpu.pipeline_mode<synchronous>, transform_indices = @transform_5, window_bounds = array<i64: 1, 512>}, {transform_indices = @transform_6, window_bounds = array<i64: 16, 128>}]} {
    %c0 = arith.constant 0 : index
    %c0_0 = arith.constant 0 : index
    %0 = vector.load %arg1[%c0, %c0_0] : memref<16x128xbf16, #tpu.memory_space<vmem>>, vector<16x128xbf16>
    %c0_1 = arith.constant 0 : index
    %c0_2 = arith.constant 0 : index
    %1 = vector.load %arg4[%c0_1, %c0_2] : memref<128x384xbf16, #tpu.memory_space<vmem>>, vector<128x128xbf16>
    %cst = arith.constant dense<0.000000e+00> : vector<16x128xf32>
    %2 = tpu.matmul %0, %1, %cst {dimension_numbers = #tpu.dot_dimension_numbers<[1], [0], [0], [1], [0, 0, 1, 1], [], []>} : vector<16x128xbf16>, vector<128x128xbf16>, vector<16x128xf32> -> vector<16x128xf32>
    %c0_3 = arith.constant 0 : index
    %c0_4 = arith.constant 0 : index
    %3 = vector.load %arg6[%c0_3, %c0_4] : memref<1x512xf32, #tpu.memory_space<vmem>>, vector<1x128xf32>
    %4 = vector.broadcast %3 : vector<1x128xf32> to vector<16x128xf32>
    %5 = arith.addf %2, %4 : vector<16x128xf32>
    %6 = arith.truncf %5 : vector<16x128xf32> to vector<16x128xbf16>
    %c0_5 = arith.constant 0 : index
    %c0_6 = arith.constant 0 : index
    %7 = vector.load %arg2[%c0_5, %c0_6] : memref<32x128xbf16, #tpu.memory_space<vmem>>, vector<32x128xbf16>
    %c0_7 = arith.constant 0 : index
    %c128 = arith.constant 128 : index
    %8 = vector.load %arg4[%c0_7, %c128] : memref<128x384xbf16, #tpu.memory_space<vmem>>, vector<128x128xbf16>
    %cst_8 = arith.constant dense<0.000000e+00> : vector<32x128xf32>
    %9 = tpu.matmul %7, %8, %cst_8 {dimension_numbers = #tpu.dot_dimension_numbers<[1], [0], [0], [1], [0, 0, 1, 1], [], []>} : vector<32x128xbf16>, vector<128x128xbf16>, vector<32x128xf32> -> vector<32x128xf32>
    %c0_9 = arith.constant 0 : index
    %c128_10 = arith.constant 128 : index
    %10 = vector.load %arg6[%c0_9, %c128_10] : memref<1x512xf32, #tpu.memory_space<vmem>>, vector<1x128xf32>
    %11 = vector.broadcast %10 : vector<1x128xf32> to vector<32x128xf32>
    %12 = arith.addf %9, %11 : vector<32x128xf32>
    %13 = arith.truncf %12 : vector<32x128xf32> to vector<32x128xbf16>
    %c0_11 = arith.constant 0 : index
    %c0_12 = arith.constant 0 : index
    %14 = vector.load %arg3[%c0_11, %c0_12] : memref<32x128xbf16, #tpu.memory_space<vmem>>, vector<32x128xbf16>
    %c0_13 = arith.constant 0 : index
    %c256 = arith.constant 256 : index
    %15 = vector.load %arg4[%c0_13, %c256] : memref<128x384xbf16, #tpu.memory_space<vmem>>, vector<128x128xbf16>
    %cst_14 = arith.constant dense<0.000000e+00> : vector<32x128xf32>
    %16 = tpu.matmul %14, %15, %cst_14 {dimension_numbers = #tpu.dot_dimension_numbers<[1], [0], [0], [1], [0, 0, 1, 1], [], []>} : vector<32x128xbf16>, vector<128x128xbf16>, vector<32x128xf32> -> vector<32x128xf32>
    %c0_15 = arith.constant 0 : index
    %c256_16 = arith.constant 256 : index
    %17 = vector.load %arg6[%c0_15, %c256_16] : memref<1x512xf32, #tpu.memory_space<vmem>>, vector<1x128xf32>
    %18 = vector.broadcast %17 : vector<1x128xf32> to vector<32x128xf32>
    %19 = arith.addf %16, %18 : vector<32x128xf32>
    %20 = arith.truncf %19 : vector<32x128xf32> to vector<32x128xbf16>
    %c0_17 = arith.constant 0 : index
    %c384 = arith.constant 384 : index
    %21 = vector.load %arg6[%c0_17, %c384] : memref<1x512xf32, #tpu.memory_space<vmem>>, vector<1x128xf32>
    %22 = vector.extract_strided_slice %6 {offsets = [0, 0], sizes = [8, 128], strides = [1, 1]} : vector<16x128xbf16> to vector<8x128xbf16>
    %23 = vector.extract_strided_slice %13 {offsets = [0, 0], sizes = [16, 128], strides = [1, 1]} : vector<32x128xbf16> to vector<16x128xbf16>
    %24 = vector.extract_strided_slice %20 {offsets = [0, 0], sizes = [16, 128], strides = [1, 1]} : vector<32x128xbf16> to vector<16x128xbf16>
    %cst_18 = arith.constant 0.000000e+00 : f32
    %25 = vector.broadcast %cst_18 : f32 to vector<8x128xf32>
    %26 = vector.extract_strided_slice %22 {offsets = [0, 0], sizes = [8, 32], strides = [1, 1]} : vector<8x128xbf16> to vector<8x32xbf16>
    %27 = vector.extract_strided_slice %23 {offsets = [0, 0], sizes = [16, 32], strides = [1, 1]} : vector<16x128xbf16> to vector<16x32xbf16>
    %28 = vector.extract_strided_slice %24 {offsets = [0, 0], sizes = [16, 32], strides = [1, 1]} : vector<16x128xbf16> to vector<16x32xbf16>
    %cst_19 = arith.constant dense<0.000000e+00> : vector<8x16xf32>
    %29 = tpu.matmul %26, %27, %cst_19 {dimension_numbers = #tpu.dot_dimension_numbers<[1], [1], [0], [0], [0, 0, 1, 0], [], []>} : vector<8x32xbf16>, vector<16x32xbf16>, vector<8x16xf32> -> vector<8x16xf32>
    %cst_20 = arith.constant dense<0xFF800000> : vector<8xf32>
    %30 = vector.multi_reduction <maximumf>, %29, %cst_20 [1] : vector<8x16xf32> to vector<8xf32>
    %31 = vector.shape_cast %30 : vector<8xf32> to vector<8x1xf32>
    %32 = vector.broadcast %31 : vector<8x1xf32> to vector<8x16xf32>
    %33 = arith.subf %29, %32 : vector<8x16xf32>
    %34 = math.exp %33 : vector<8x16xf32>
    %cst_21 = arith.constant dense<0.000000e+00> : vector<8xf32>
    %35 = vector.multi_reduction <add>, %34, %cst_21 [1] : vector<8x16xf32> to vector<8xf32>
    %36 = vector.shape_cast %35 : vector<8xf32> to vector<8x1xf32>
    %cst_22 = arith.constant 1.000000e+00 : f32
    %37 = vector.broadcast %cst_22 : f32 to vector<8x1xf32>
    %38 = arith.divf %37, %36 : vector<8x1xf32>
    %39 = vector.broadcast %38 : vector<8x1xf32> to vector<8x16xf32>
    %40 = arith.mulf %34, %39 : vector<8x16xf32>
    %41 = arith.truncf %40 : vector<8x16xf32> to vector<8x16xbf16>
    %cst_23 = arith.constant dense<0.000000e+00> : vector<8x32xf32>
    %42 = tpu.matmul %41, %28, %cst_23 {dimension_numbers = #tpu.dot_dimension_numbers<[1], [0], [0], [1], [0, 0, 1, 1], [], []>} : vector<8x16xbf16>, vector<16x32xbf16>, vector<8x32xf32> -> vector<8x32xf32>
    %43 = arith.truncf %42 : vector<8x32xf32> to vector<8x32xbf16>
    %c0_24 = arith.constant 0 : index
    %c0_25 = arith.constant 0 : index
    %c0_26 = arith.constant 0 : index
    %44 = vector.load %arg5[%c0_24, %c0_25, %c0_26] : memref<4x32x128xbf16, #tpu.memory_space<vmem>>, vector<1x32x128xbf16>
    %45 = vector.shape_cast %44 : vector<1x32x128xbf16> to vector<32x128xbf16>
    %cst_27 = arith.constant dense<0.000000e+00> : vector<8x128xf32>
    %46 = tpu.matmul %43, %45, %cst_27 {dimension_numbers = #tpu.dot_dimension_numbers<[1], [0], [0], [1], [0, 0, 1, 1], [], []>} : vector<8x32xbf16>, vector<32x128xbf16>, vector<8x128xf32> -> vector<8x128xf32>
    %47 = arith.addf %25, %46 : vector<8x128xf32>
    %48 = vector.extract_strided_slice %22 {offsets = [0, 32], sizes = [8, 32], strides = [1, 1]} : vector<8x128xbf16> to vector<8x32xbf16>
    %49 = vector.extract_strided_slice %23 {offsets = [0, 32], sizes = [16, 32], strides = [1, 1]} : vector<16x128xbf16> to vector<16x32xbf16>
    %50 = vector.extract_strided_slice %24 {offsets = [0, 32], sizes = [16, 32], strides = [1, 1]} : vector<16x128xbf16> to vector<16x32xbf16>
    %cst_28 = arith.constant dense<0.000000e+00> : vector<8x16xf32>
    %51 = tpu.matmul %48, %49, %cst_28 {dimension_numbers = #tpu.dot_dimension_numbers<[1], [1], [0], [0], [0, 0, 1, 0], [], []>} : vector<8x32xbf16>, vector<16x32xbf16>, vector<8x16xf32> -> vector<8x16xf32>
    %cst_29 = arith.constant dense<0xFF800000> : vector<8xf32>
    %52 = vector.multi_reduction <maximumf>, %51, %cst_29 [1] : vector<8x16xf32> to vector<8xf32>
    %53 = vector.shape_cast %52 : vector<8xf32> to vector<8x1xf32>
    %54 = vector.broadcast %53 : vector<8x1xf32> to vector<8x16xf32>
    %55 = arith.subf %51, %54 : vector<8x16xf32>
    %56 = math.exp %55 : vector<8x16xf32>
    %cst_30 = arith.constant dense<0.000000e+00> : vector<8xf32>
    %57 = vector.multi_reduction <add>, %56, %cst_30 [1] : vector<8x16xf32> to vector<8xf32>
    %58 = vector.shape_cast %57 : vector<8xf32> to vector<8x1xf32>
    %cst_31 = arith.constant 1.000000e+00 : f32
    %59 = vector.broadcast %cst_31 : f32 to vector<8x1xf32>
    %60 = arith.divf %59, %58 : vector<8x1xf32>
    %61 = vector.broadcast %60 : vector<8x1xf32> to vector<8x16xf32>
    %62 = arith.mulf %56, %61 : vector<8x16xf32>
    %63 = arith.truncf %62 : vector<8x16xf32> to vector<8x16xbf16>
    %cst_32 = arith.constant dense<0.000000e+00> : vector<8x32xf32>
    %64 = tpu.matmul %63, %50, %cst_32 {dimension_numbers = #tpu.dot_dimension_numbers<[1], [0], [0], [1], [0, 0, 1, 1], [], []>} : vector<8x16xbf16>, vector<16x32xbf16>, vector<8x32xf32> -> vector<8x32xf32>
    %65 = arith.truncf %64 : vector<8x32xf32> to vector<8x32xbf16>
    %c1 = arith.constant 1 : index
    %c0_33 = arith.constant 0 : index
    %c0_34 = arith.constant 0 : index
    %66 = vector.load %arg5[%c1, %c0_33, %c0_34] : memref<4x32x128xbf16, #tpu.memory_space<vmem>>, vector<1x32x128xbf16>
    %67 = vector.shape_cast %66 : vector<1x32x128xbf16> to vector<32x128xbf16>
    %cst_35 = arith.constant dense<0.000000e+00> : vector<8x128xf32>
    %68 = tpu.matmul %65, %67, %cst_35 {dimension_numbers = #tpu.dot_dimension_numbers<[1], [0], [0], [1], [0, 0, 1, 1], [], []>} : vector<8x32xbf16>, vector<32x128xbf16>, vector<8x128xf32> -> vector<8x128xf32>
    %69 = arith.addf %47, %68 : vector<8x128xf32>
    %70 = vector.extract_strided_slice %22 {offsets = [0, 64], sizes = [8, 32], strides = [1, 1]} : vector<8x128xbf16> to vector<8x32xbf16>
    %71 = vector.extract_strided_slice %23 {offsets = [0, 64], sizes = [16, 32], strides = [1, 1]} : vector<16x128xbf16> to vector<16x32xbf16>
    %72 = vector.extract_strided_slice %24 {offsets = [0, 64], sizes = [16, 32], strides = [1, 1]} : vector<16x128xbf16> to vector<16x32xbf16>
    %cst_36 = arith.constant dense<0.000000e+00> : vector<8x16xf32>
    %73 = tpu.matmul %70, %71, %cst_36 {dimension_numbers = #tpu.dot_dimension_numbers<[1], [1], [0], [0], [0, 0, 1, 0], [], []>} : vector<8x32xbf16>, vector<16x32xbf16>, vector<8x16xf32> -> vector<8x16xf32>
    %cst_37 = arith.constant dense<0xFF800000> : vector<8xf32>
    %74 = vector.multi_reduction <maximumf>, %73, %cst_37 [1] : vector<8x16xf32> to vector<8xf32>
    %75 = vector.shape_cast %74 : vector<8xf32> to vector<8x1xf32>
    %76 = vector.broadcast %75 : vector<8x1xf32> to vector<8x16xf32>
    %77 = arith.subf %73, %76 : vector<8x16xf32>
    %78 = math.exp %77 : vector<8x16xf32>
    %cst_38 = arith.constant dense<0.000000e+00> : vector<8xf32>
    %79 = vector.multi_reduction <add>, %78, %cst_38 [1] : vector<8x16xf32> to vector<8xf32>
    %80 = vector.shape_cast %79 : vector<8xf32> to vector<8x1xf32>
    %cst_39 = arith.constant 1.000000e+00 : f32
    %81 = vector.broadcast %cst_39 : f32 to vector<8x1xf32>
    %82 = arith.divf %81, %80 : vector<8x1xf32>
    %83 = vector.broadcast %82 : vector<8x1xf32> to vector<8x16xf32>
    %84 = arith.mulf %78, %83 : vector<8x16xf32>
    %85 = arith.truncf %84 : vector<8x16xf32> to vector<8x16xbf16>
    %cst_40 = arith.constant dense<0.000000e+00> : vector<8x32xf32>
    %86 = tpu.matmul %85, %72, %cst_40 {dimension_numbers = #tpu.dot_dimension_numbers<[1], [0], [0], [1], [0, 0, 1, 1], [], []>} : vector<8x16xbf16>, vector<16x32xbf16>, vector<8x32xf32> -> vector<8x32xf32>
    %87 = arith.truncf %86 : vector<8x32xf32> to vector<8x32xbf16>
    %c2 = arith.constant 2 : index
    %c0_41 = arith.constant 0 : index
    %c0_42 = arith.constant 0 : index
    %88 = vector.load %arg5[%c2, %c0_41, %c0_42] : memref<4x32x128xbf16, #tpu.memory_space<vmem>>, vector<1x32x128xbf16>
    %89 = vector.shape_cast %88 : vector<1x32x128xbf16> to vector<32x128xbf16>
    %cst_43 = arith.constant dense<0.000000e+00> : vector<8x128xf32>
    %90 = tpu.matmul %87, %89, %cst_43 {dimension_numbers = #tpu.dot_dimension_numbers<[1], [0], [0], [1], [0, 0, 1, 1], [], []>} : vector<8x32xbf16>, vector<32x128xbf16>, vector<8x128xf32> -> vector<8x128xf32>
    %91 = arith.addf %69, %90 : vector<8x128xf32>
    %92 = vector.extract_strided_slice %22 {offsets = [0, 96], sizes = [8, 32], strides = [1, 1]} : vector<8x128xbf16> to vector<8x32xbf16>
    %93 = vector.extract_strided_slice %23 {offsets = [0, 96], sizes = [16, 32], strides = [1, 1]} : vector<16x128xbf16> to vector<16x32xbf16>
    %94 = vector.extract_strided_slice %24 {offsets = [0, 96], sizes = [16, 32], strides = [1, 1]} : vector<16x128xbf16> to vector<16x32xbf16>
    %cst_44 = arith.constant dense<0.000000e+00> : vector<8x16xf32>
    %95 = tpu.matmul %92, %93, %cst_44 {dimension_numbers = #tpu.dot_dimension_numbers<[1], [1], [0], [0], [0, 0, 1, 0], [], []>} : vector<8x32xbf16>, vector<16x32xbf16>, vector<8x16xf32> -> vector<8x16xf32>
    %cst_45 = arith.constant dense<0xFF800000> : vector<8xf32>
    %96 = vector.multi_reduction <maximumf>, %95, %cst_45 [1] : vector<8x16xf32> to vector<8xf32>
    %97 = vector.shape_cast %96 : vector<8xf32> to vector<8x1xf32>
    %98 = vector.broadcast %97 : vector<8x1xf32> to vector<8x16xf32>
    %99 = arith.subf %95, %98 : vector<8x16xf32>
    %100 = math.exp %99 : vector<8x16xf32>
    %cst_46 = arith.constant dense<0.000000e+00> : vector<8xf32>
    %101 = vector.multi_reduction <add>, %100, %cst_46 [1] : vector<8x16xf32> to vector<8xf32>
    %102 = vector.shape_cast %101 : vector<8xf32> to vector<8x1xf32>
    %cst_47 = arith.constant 1.000000e+00 : f32
    %103 = vector.broadcast %cst_47 : f32 to vector<8x1xf32>
    %104 = arith.divf %103, %102 : vector<8x1xf32>
    %105 = vector.broadcast %104 : vector<8x1xf32> to vector<8x16xf32>
    %106 = arith.mulf %100, %105 : vector<8x16xf32>
    %107 = arith.truncf %106 : vector<8x16xf32> to vector<8x16xbf16>
    %cst_48 = arith.constant dense<0.000000e+00> : vector<8x32xf32>
    %108 = tpu.matmul %107, %94, %cst_48 {dimension_numbers = #tpu.dot_dimension_numbers<[1], [0], [0], [1], [0, 0, 1, 1], [], []>} : vector<8x16xbf16>, vector<16x32xbf16>, vector<8x32xf32> -> vector<8x32xf32>
    %109 = arith.truncf %108 : vector<8x32xf32> to vector<8x32xbf16>
    %c3 = arith.constant 3 : index
    %c0_49 = arith.constant 0 : index
    %c0_50 = arith.constant 0 : index
    %110 = vector.load %arg5[%c3, %c0_49, %c0_50] : memref<4x32x128xbf16, #tpu.memory_space<vmem>>, vector<1x32x128xbf16>
    %111 = vector.shape_cast %110 : vector<1x32x128xbf16> to vector<32x128xbf16>
    %cst_51 = arith.constant dense<0.000000e+00> : vector<8x128xf32>
    %112 = tpu.matmul %109, %111, %cst_51 {dimension_numbers = #tpu.dot_dimension_numbers<[1], [0], [0], [1], [0, 0, 1, 1], [], []>} : vector<8x32xbf16>, vector<32x128xbf16>, vector<8x128xf32> -> vector<8x128xf32>
    %113 = arith.addf %91, %112 : vector<8x128xf32>
    %114 = vector.broadcast %21 : vector<1x128xf32> to vector<8x128xf32>
    %115 = arith.addf %113, %114 : vector<8x128xf32>
    %c0_52 = arith.constant 0 : index
    %c0_53 = arith.constant 0 : index
    %116 = vector.load %arg7[%c0_52, %c0_53] : memref<16x128xf32, #tpu.memory_space<vmem>>, vector<8x128xf32>
    tpu.vector_store %arg7[%c0_52, %c0_53], %115 {strides = array<i32>} : memref<16x128xf32, #tpu.memory_space<vmem>>, vector<8x128xf32>,
    %117 = vector.extract_strided_slice %6 {offsets = [8, 0], sizes = [8, 128], strides = [1, 1]} : vector<16x128xbf16> to vector<8x128xbf16>
    %118 = vector.extract_strided_slice %13 {offsets = [16, 0], sizes = [16, 128], strides = [1, 1]} : vector<32x128xbf16> to vector<16x128xbf16>
    %119 = vector.extract_strided_slice %20 {offsets = [16, 0], sizes = [16, 128], strides = [1, 1]} : vector<32x128xbf16> to vector<16x128xbf16>
    %cst_54 = arith.constant 0.000000e+00 : f32
    %120 = vector.broadcast %cst_54 : f32 to vector<8x128xf32>
    %121 = vector.extract_strided_slice %117 {offsets = [0, 0], sizes = [8, 32], strides = [1, 1]} : vector<8x128xbf16> to vector<8x32xbf16>
    %122 = vector.extract_strided_slice %118 {offsets = [0, 0], sizes = [16, 32], strides = [1, 1]} : vector<16x128xbf16> to vector<16x32xbf16>
    %123 = vector.extract_strided_slice %119 {offsets = [0, 0], sizes = [16, 32], strides = [1, 1]} : vector<16x128xbf16> to vector<16x32xbf16>
    %cst_55 = arith.constant dense<0.000000e+00> : vector<8x16xf32>
    %124 = tpu.matmul %121, %122, %cst_55 {dimension_numbers = #tpu.dot_dimension_numbers<[1], [1], [0], [0], [0, 0, 1, 0], [], []>} : vector<8x32xbf16>, vector<16x32xbf16>, vector<8x16xf32> -> vector<8x16xf32>
    %cst_56 = arith.constant dense<0xFF800000> : vector<8xf32>
    %125 = vector.multi_reduction <maximumf>, %124, %cst_56 [1] : vector<8x16xf32> to vector<8xf32>
    %126 = vector.shape_cast %125 : vector<8xf32> to vector<8x1xf32>
    %127 = vector.broadcast %126 : vector<8x1xf32> to vector<8x16xf32>
    %128 = arith.subf %124, %127 : vector<8x16xf32>
    %129 = math.exp %128 : vector<8x16xf32>
    %cst_57 = arith.constant dense<0.000000e+00> : vector<8xf32>
    %130 = vector.multi_reduction <add>, %129, %cst_57 [1] : vector<8x16xf32> to vector<8xf32>
    %131 = vector.shape_cast %130 : vector<8xf32> to vector<8x1xf32>
    %cst_58 = arith.constant 1.000000e+00 : f32
    %132 = vector.broadcast %cst_58 : f32 to vector<8x1xf32>
    %133 = arith.divf %132, %131 : vector<8x1xf32>
    %134 = vector.broadcast %133 : vector<8x1xf32> to vector<8x16xf32>
    %135 = arith.mulf %129, %134 : vector<8x16xf32>
    %136 = arith.truncf %135 : vector<8x16xf32> to vector<8x16xbf16>
    %cst_59 = arith.constant dense<0.000000e+00> : vector<8x32xf32>
    %137 = tpu.matmul %136, %123, %cst_59 {dimension_numbers = #tpu.dot_dimension_numbers<[1], [0], [0], [1], [0, 0, 1, 1], [], []>} : vector<8x16xbf16>, vector<16x32xbf16>, vector<8x32xf32> -> vector<8x32xf32>
    %138 = arith.truncf %137 : vector<8x32xf32> to vector<8x32xbf16>
    %c0_60 = arith.constant 0 : index
    %c0_61 = arith.constant 0 : index
    %c0_62 = arith.constant 0 : index
    %139 = vector.load %arg5[%c0_60, %c0_61, %c0_62] : memref<4x32x128xbf16, #tpu.memory_space<vmem>>, vector<1x32x128xbf16>
    %140 = vector.shape_cast %139 : vector<1x32x128xbf16> to vector<32x128xbf16>
    %cst_63 = arith.constant dense<0.000000e+00> : vector<8x128xf32>
    %141 = tpu.matmul %138, %140, %cst_63 {dimension_numbers = #tpu.dot_dimension_numbers<[1], [0], [0], [1], [0, 0, 1, 1], [], []>} : vector<8x32xbf16>, vector<32x128xbf16>, vector<8x128xf32> -> vector<8x128xf32>
    %142 = arith.addf %120, %141 : vector<8x128xf32>
    %143 = vector.extract_strided_slice %117 {offsets = [0, 32], sizes = [8, 32], strides = [1, 1]} : vector<8x128xbf16> to vector<8x32xbf16>
    %144 = vector.extract_strided_slice %118 {offsets = [0, 32], sizes = [16, 32], strides = [1, 1]} : vector<16x128xbf16> to vector<16x32xbf16>
    %145 = vector.extract_strided_slice %119 {offsets = [0, 32], sizes = [16, 32], strides = [1, 1]} : vector<16x128xbf16> to vector<16x32xbf16>
    %cst_64 = arith.constant dense<0.000000e+00> : vector<8x16xf32>
    %146 = tpu.matmul %143, %144, %cst_64 {dimension_numbers = #tpu.dot_dimension_numbers<[1], [1], [0], [0], [0, 0, 1, 0], [], []>} : vector<8x32xbf16>, vector<16x32xbf16>, vector<8x16xf32> -> vector<8x16xf32>
    %cst_65 = arith.constant dense<0xFF800000> : vector<8xf32>
    %147 = vector.multi_reduction <maximumf>, %146, %cst_65 [1] : vector<8x16xf32> to vector<8xf32>
    %148 = vector.shape_cast %147 : vector<8xf32> to vector<8x1xf32>
    %149 = vector.broadcast %148 : vector<8x1xf32> to vector<8x16xf32>
    %150 = arith.subf %146, %149 : vector<8x16xf32>
    %151 = math.exp %150 : vector<8x16xf32>
    %cst_66 = arith.constant dense<0.000000e+00> : vector<8xf32>
    %152 = vector.multi_reduction <add>, %151, %cst_66 [1] : vector<8x16xf32> to vector<8xf32>
    %153 = vector.shape_cast %152 : vector<8xf32> to vector<8x1xf32>
    %cst_67 = arith.constant 1.000000e+00 : f32
    %154 = vector.broadcast %cst_67 : f32 to vector<8x1xf32>
    %155 = arith.divf %154, %153 : vector<8x1xf32>
    %156 = vector.broadcast %155 : vector<8x1xf32> to vector<8x16xf32>
    %157 = arith.mulf %151, %156 : vector<8x16xf32>
    %158 = arith.truncf %157 : vector<8x16xf32> to vector<8x16xbf16>
    %cst_68 = arith.constant dense<0.000000e+00> : vector<8x32xf32>
    %159 = tpu.matmul %158, %145, %cst_68 {dimension_numbers = #tpu.dot_dimension_numbers<[1], [0], [0], [1], [0, 0, 1, 1], [], []>} : vector<8x16xbf16>, vector<16x32xbf16>, vector<8x32xf32> -> vector<8x32xf32>
    %160 = arith.truncf %159 : vector<8x32xf32> to vector<8x32xbf16>
    %c1_69 = arith.constant 1 : index
    %c0_70 = arith.constant 0 : index
    %c0_71 = arith.constant 0 : index
    %161 = vector.load %arg5[%c1_69, %c0_70, %c0_71] : memref<4x32x128xbf16, #tpu.memory_space<vmem>>, vector<1x32x128xbf16>
    %162 = vector.shape_cast %161 : vector<1x32x128xbf16> to vector<32x128xbf16>
    %cst_72 = arith.constant dense<0.000000e+00> : vector<8x128xf32>
    %163 = tpu.matmul %160, %162, %cst_72 {dimension_numbers = #tpu.dot_dimension_numbers<[1], [0], [0], [1], [0, 0, 1, 1], [], []>} : vector<8x32xbf16>, vector<32x128xbf16>, vector<8x128xf32> -> vector<8x128xf32>
    %164 = arith.addf %142, %163 : vector<8x128xf32>
    %165 = vector.extract_strided_slice %117 {offsets = [0, 64], sizes = [8, 32], strides = [1, 1]} : vector<8x128xbf16> to vector<8x32xbf16>
    %166 = vector.extract_strided_slice %118 {offsets = [0, 64], sizes = [16, 32], strides = [1, 1]} : vector<16x128xbf16> to vector<16x32xbf16>
    %167 = vector.extract_strided_slice %119 {offsets = [0, 64], sizes = [16, 32], strides = [1, 1]} : vector<16x128xbf16> to vector<16x32xbf16>
    %cst_73 = arith.constant dense<0.000000e+00> : vector<8x16xf32>
    %168 = tpu.matmul %165, %166, %cst_73 {dimension_numbers = #tpu.dot_dimension_numbers<[1], [1], [0], [0], [0, 0, 1, 0], [], []>} : vector<8x32xbf16>, vector<16x32xbf16>, vector<8x16xf32> -> vector<8x16xf32>
    %cst_74 = arith.constant dense<0xFF800000> : vector<8xf32>
    %169 = vector.multi_reduction <maximumf>, %168, %cst_74 [1] : vector<8x16xf32> to vector<8xf32>
    %170 = vector.shape_cast %169 : vector<8xf32> to vector<8x1xf32>
    %171 = vector.broadcast %170 : vector<8x1xf32> to vector<8x16xf32>
    %172 = arith.subf %168, %171 : vector<8x16xf32>
    %173 = math.exp %172 : vector<8x16xf32>
    %cst_75 = arith.constant dense<0.000000e+00> : vector<8xf32>
    %174 = vector.multi_reduction <add>, %173, %cst_75 [1] : vector<8x16xf32> to vector<8xf32>
    %175 = vector.shape_cast %174 : vector<8xf32> to vector<8x1xf32>
    %cst_76 = arith.constant 1.000000e+00 : f32
    %176 = vector.broadcast %cst_76 : f32 to vector<8x1xf32>
    %177 = arith.divf %176, %175 : vector<8x1xf32>
    %178 = vector.broadcast %177 : vector<8x1xf32> to vector<8x16xf32>
    %179 = arith.mulf %173, %178 : vector<8x16xf32>
    %180 = arith.truncf %179 : vector<8x16xf32> to vector<8x16xbf16>
    %cst_77 = arith.constant dense<0.000000e+00> : vector<8x32xf32>
    %181 = tpu.matmul %180, %167, %cst_77 {dimension_numbers = #tpu.dot_dimension_numbers<[1], [0], [0], [1], [0, 0, 1, 1], [], []>} : vector<8x16xbf16>, vector<16x32xbf16>, vector<8x32xf32> -> vector<8x32xf32>
    %182 = arith.truncf %181 : vector<8x32xf32> to vector<8x32xbf16>
    %c2_78 = arith.constant 2 : index
    %c0_79 = arith.constant 0 : index
    %c0_80 = arith.constant 0 : index
    %183 = vector.load %arg5[%c2_78, %c0_79, %c0_80] : memref<4x32x128xbf16, #tpu.memory_space<vmem>>, vector<1x32x128xbf16>
    %184 = vector.shape_cast %183 : vector<1x32x128xbf16> to vector<32x128xbf16>
    %cst_81 = arith.constant dense<0.000000e+00> : vector<8x128xf32>
    %185 = tpu.matmul %182, %184, %cst_81 {dimension_numbers = #tpu.dot_dimension_numbers<[1], [0], [0], [1], [0, 0, 1, 1], [], []>} : vector<8x32xbf16>, vector<32x128xbf16>, vector<8x128xf32> -> vector<8x128xf32>
    %186 = arith.addf %164, %185 : vector<8x128xf32>
    %187 = vector.extract_strided_slice %117 {offsets = [0, 96], sizes = [8, 32], strides = [1, 1]} : vector<8x128xbf16> to vector<8x32xbf16>
    %188 = vector.extract_strided_slice %118 {offsets = [0, 96], sizes = [16, 32], strides = [1, 1]} : vector<16x128xbf16> to vector<16x32xbf16>
    %189 = vector.extract_strided_slice %119 {offsets = [0, 96], sizes = [16, 32], strides = [1, 1]} : vector<16x128xbf16> to vector<16x32xbf16>
    %cst_82 = arith.constant dense<0.000000e+00> : vector<8x16xf32>
    %190 = tpu.matmul %187, %188, %cst_82 {dimension_numbers = #tpu.dot_dimension_numbers<[1], [1], [0], [0], [0, 0, 1, 0], [], []>} : vector<8x32xbf16>, vector<16x32xbf16>, vector<8x16xf32> -> vector<8x16xf32>
    %cst_83 = arith.constant dense<0xFF800000> : vector<8xf32>
    %191 = vector.multi_reduction <maximumf>, %190, %cst_83 [1] : vector<8x16xf32> to vector<8xf32>
    %192 = vector.shape_cast %191 : vector<8xf32> to vector<8x1xf32>
    %193 = vector.broadcast %192 : vector<8x1xf32> to vector<8x16xf32>
    %194 = arith.subf %190, %193 : vector<8x16xf32>
    %195 = math.exp %194 : vector<8x16xf32>
    %cst_84 = arith.constant dense<0.000000e+00> : vector<8xf32>
    %196 = vector.multi_reduction <add>, %195, %cst_84 [1] : vector<8x16xf32> to vector<8xf32>
    %197 = vector.shape_cast %196 : vector<8xf32> to vector<8x1xf32>
    %cst_85 = arith.constant 1.000000e+00 : f32
    %198 = vector.broadcast %cst_85 : f32 to vector<8x1xf32>
    %199 = arith.divf %198, %197 : vector<8x1xf32>
    %200 = vector.broadcast %199 : vector<8x1xf32> to vector<8x16xf32>
    %201 = arith.mulf %195, %200 : vector<8x16xf32>
    %202 = arith.truncf %201 : vector<8x16xf32> to vector<8x16xbf16>
    %cst_86 = arith.constant dense<0.000000e+00> : vector<8x32xf32>
    %203 = tpu.matmul %202, %189, %cst_86 {dimension_numbers = #tpu.dot_dimension_numbers<[1], [0], [0], [1], [0, 0, 1, 1], [], []>} : vector<8x16xbf16>, vector<16x32xbf16>, vector<8x32xf32> -> vector<8x32xf32>
    %204 = arith.truncf %203 : vector<8x32xf32> to vector<8x32xbf16>
    %c3_87 = arith.constant 3 : index
    %c0_88 = arith.constant 0 : index
    %c0_89 = arith.constant 0 : index
    %205 = vector.load %arg5[%c3_87, %c0_88, %c0_89] : memref<4x32x128xbf16, #tpu.memory_space<vmem>>, vector<1x32x128xbf16>
    %206 = vector.shape_cast %205 : vector<1x32x128xbf16> to vector<32x128xbf16>
    %cst_90 = arith.constant dense<0.000000e+00> : vector<8x128xf32>
    %207 = tpu.matmul %204, %206, %cst_90 {dimension_numbers = #tpu.dot_dimension_numbers<[1], [0], [0], [1], [0, 0, 1, 1], [], []>} : vector<8x32xbf16>, vector<32x128xbf16>, vector<8x128xf32> -> vector<8x128xf32>
    %208 = arith.addf %186, %207 : vector<8x128xf32>
    %209 = vector.broadcast %21 : vector<1x128xf32> to vector<8x128xf32>
    %210 = arith.addf %208, %209 : vector<8x128xf32>
    %c8 = arith.constant 8 : index
    %c0_91 = arith.constant 0 : index
    %211 = vector.load %arg7[%c8, %c0_91] : memref<16x128xf32, #tpu.memory_space<vmem>>, vector<8x128xf32>
    tpu.vector_store %arg7[%c8, %c0_91], %210 {strides = array<i32>} : memref<16x128xf32, #tpu.memory_space<vmem>>, vector<8x128xf32>,
    return
  }
  func.func @transform_0(%arg0: i32) -> (i32, i32) {
    %c0_i32 = arith.constant 0 : i32
    %c0_i32_0 = arith.constant 0 : i32
    return %arg0, %c0_i32 : i32, i32
  }
  func.func @transform_1(%arg0: i32) -> (i32, i32) {
    %c0_i32 = arith.constant 0 : i32
    %c0_i32_0 = arith.constant 0 : i32
    return %arg0, %c0_i32 : i32, i32
  }
  func.func @transform_2(%arg0: i32) -> (i32, i32) {
    %c0_i32 = arith.constant 0 : i32
    %c0_i32_0 = arith.constant 0 : i32
    return %arg0, %c0_i32 : i32, i32
  }
  func.func @transform_3(%arg0: i32) -> (i32, i32) {
    %c0_i32 = arith.constant 0 : i32
    %c0_i32_0 = arith.constant 0 : i32
    %c0_i32_1 = arith.constant 0 : i32
    return %c0_i32, %c0_i32_0 : i32, i32
  }
  func.func @transform_4(%arg0: i32) -> (i32, i32, i32) {
    %c0_i32 = arith.constant 0 : i32
    %c0_i32_0 = arith.constant 0 : i32
    %c0_i32_1 = arith.constant 0 : i32
    %c0_i32_2 = arith.constant 0 : i32
    return %c0_i32, %c0_i32_0, %c0_i32_1 : i32, i32, i32
  }
  func.func @transform_5(%arg0: i32) -> (i32, i32) {
    %c0_i32 = arith.constant 0 : i32
    %c0_i32_0 = arith.constant 0 : i32
    %c0_i32_1 = arith.constant 0 : i32
    return %c0_i32, %c0_i32_0 : i32, i32
  }
  func.func @transform_6(%arg0: i32) -> (i32, i32) {
    %c0_i32 = arith.constant 0 : i32
    %c0_i32_0 = arith.constant 0 : i32
    return %arg0, %c0_i32 : i32, i32
  }
}

</mosaic_0001>

<bundles_post_ra>
// kernel: tpu_custom_call.1
= control target key start
LH: loop header
LB: loop body
LE: loop exit
PB: predicated region body
PF: predicated region fallthrough
CT: control target
= control target key end

     0   :  { %11 = vsyncpa [#allocation3], 0  ;;  %s2851_s0 = inlined_call_operand.hbm [shape: bf16[16,128], index: 0, kind: input, shape index: {}]   ;;  %s2852_s1 = inlined_call_operand.hbm [shape: bf16[32,128], index: 1, kind: input, shape index: {}]   ;;  %s2853_s2 = inlined_call_operand.hbm [shape: bf16[32,128], index: 2, kind: input, shape index: {}]   ;;  %s2854_s3 = inlined_call_operand.hbm [shape: bf16[128,384], index: 3, kind: input, shape index: {}]   ;;  %s2855_s4 = inlined_call_operand.hbm [shape: bf16[4,32,128], index: 4, kind: input, shape index: {}]   ;;  %s2856_s5 = inlined_call_operand.vmem [shape: f32[1,512], index: 5, kind: input, shape index: {}]   ;;  %s2857_s6 = inlined_call_operand.hbm [shape: f32[16,128], index: 6, kind: output, shape index: {}]  }
   0x1   :  { %12 = vsyncpa [#allocation6], 0 }
   0x2   :  { %13 = vsyncpa [#allocation9], 0 }
   0x3   :  { %14 = vsyncpa [#allocation4], 0  ;;  %s2484_s21 = smov [#allocation5]   ;;  %s2485_s23 = smov [#allocation8]  }
   0x4   :  { %s32_s22 = sshll.u32 %s2484_s21, 4  ;;  %s56_s24 = sshll.u32 %s2485_s23, 4  ;;  %s33_s22 = int_to_ptr.vmem [resolvable:$true] %s32_s22  ;;  %s2535_s24 = int_to_ptr.vmem [resolvable:$true] %s56_s24 }
   0x5   :  { %s2344_s27 = scalar_lea.hbm %s2852_s1, 256 }
   0x6   :  { %p2345_p0 = scmp.ne.s32.totalorder %s2852_s1, %s2344_s27  ;;  %p2348_p1 = scmp.lt.u32.totalorder %s2344_s27, %s2852_s1 }
   0x8   :  { %p2350_p2 = pnand %p2348_p1, %p2345_p0 }
   0xa   :  { %2353 = shalt.err (!%p2350_p2)
}
   0xb   :  { %s2354_s8 = scalar_lea.vmem %s33_s22, 256  ;;  %p2359_p4 = scmp.lt.s32.totalorder %s33_s22, %s33_s22 }
   0xc   :  { %p2355_p3 = scmp.ne.s32.totalorder %s33_s22, %s2354_s8  ;;  %p2360_p5 = scmp.lt.s32.totalorder %s2354_s8, %s2354_s8 }
   0xe   :  { %p2361_p6 = por %p2360_p5, %p2359_p4 }
  0x10   :  { %p2362_p7 = pnand %p2361_p6, %p2355_p3 }
  0x12   :  { %2365 = shalt.err (!%p2362_p7)
}
  0x13   :  { %s2486_s9 = smov 64   ;;  %s2487_s10 = smov 4  }
  0x14   :  { %38 = dma.hbm_to_vmem [thread:$0]  %s2852_s1, 256, %s33_s22, [#allocation6], %s2486_s9, %s2486_s9, %s2487_s10  }
  0x15   :  { %s2366_s15 = scalar_lea.hbm %s2854_s3, 3072 }
  0x16   :  { %p2367_p8 = scmp.ne.s32.totalorder %s2854_s3, %s2366_s15  ;;  %p2370_p9 = scmp.lt.u32.totalorder %s2366_s15, %s2854_s3 }
  0x18   :  { %p2372_p10 = pnand %p2370_p9, %p2367_p8 }
  0x1a   :  { %2375 = shalt.err (!%p2372_p10)
}
  0x1b   :  { %s2376_s20 = scalar_lea.vmem %s2535_s24, 3072  ;;  %p2381_p12 = scmp.lt.s32.totalorder %s2535_s24, %s2535_s24 }
  0x1c   :  { %p2377_p11 = scmp.ne.s32.totalorder %s2535_s24, %s2376_s20  ;;  %p2382_p13 = scmp.lt.s32.totalorder %s2376_s20, %s2376_s20 }
  0x1e   :  { %p2383_p0 = por %p2382_p13, %p2381_p12 }
  0x20   :  { %p2384_p1 = pnand %p2383_p0, %p2377_p11 }
  0x22   :  { %2387 = shalt.err (!%p2384_p1)
}
  0x23   :  { %s2488_s1 = smov 192   ;;  %s2489_s21 = smov 12  }
  0x24   :  { %62 = dma.hbm_to_vmem [thread:$0]  %s2854_s3, 3072, %s2535_s24, [#allocation9], %s2488_s1, %s2488_s1, %s2489_s21  }
  0x25   :  { %s2490_s25 = smov [#allocation2]   ;;  %s2491_s27 = smov [#allocation7]  }
  0x26   :  { %s20_s26 = sshll.u32 %s2490_s25, 4  ;;  %s44_s28 = sshll.u32 %s2491_s27, 4  ;;  %s21_s26 = int_to_ptr.vmem [resolvable:$true] %s20_s26  ;;  %s2569_s28 = int_to_ptr.vmem [resolvable:$true] %s44_s28 }
  0x27   :  { %s2388_s7 = scalar_lea.hbm %s2851_s0, 128 }
  0x28   :  { %p2389_p2 = scmp.ne.s32.totalorder %s2851_s0, %s2388_s7  ;;  %p2392_p3 = scmp.lt.u32.totalorder %s2388_s7, %s2851_s0 }
  0x2a   :  { %p2394_p4 = pnand %p2392_p3, %p2389_p2 }
  0x2c   :  { %2397 = shalt.err (!%p2394_p4)
}
  0x2d   :  { %s2398_s3 = scalar_lea.vmem %s21_s26, 128  ;;  %p2403_p6 = scmp.lt.s32.totalorder %s21_s26, %s21_s26 }
  0x2e   :  { %p2399_p5 = scmp.ne.s32.totalorder %s21_s26, %s2398_s3  ;;  %p2404_p7 = scmp.lt.s32.totalorder %s2398_s3, %s2398_s3 }
  0x30   :  { %p2405_p8 = por %p2404_p7, %p2403_p6 }
  0x32   :  { %p2406_p9 = pnand %p2405_p8, %p2399_p5 }
  0x34   :  { %2409 = shalt.err (!%p2406_p9)
}
  0x35   :  { %26 = dma.hbm_to_vmem [thread:$0]  %s2851_s0, 128, %s21_s26, [#allocation3], %s2486_s9, %s2486_s9, %s2487_s10  }
  0x36   :  { %s2410_s17 = scalar_lea.hbm %s2853_s2, 256 }
  0x37   :  { %p2411_p10 = scmp.ne.s32.totalorder %s2853_s2, %s2410_s17  ;;  %p2414_p11 = scmp.lt.u32.totalorder %s2410_s17, %s2853_s2 }
  0x39   :  { %p2416_p12 = pnand %p2414_p11, %p2411_p10 }
  0x3b   :  { %2419 = shalt.err (!%p2416_p12)
}
  0x3c   :  { %s2420_s21 = scalar_lea.vmem %s2569_s28, 256  ;;  %p2425_p0 = scmp.lt.s32.totalorder %s2569_s28, %s2569_s28 }
  0x3d   :  { %p2421_p13 = scmp.ne.s32.totalorder %s2569_s28, %s2420_s21  ;;  %p2426_p1 = scmp.lt.s32.totalorder %s2420_s21, %s2420_s21 }
  0x3f   :  { %p2427_p2 = por %p2426_p1, %p2425_p0 }
  0x41   :  { %p2428_p3 = pnand %p2427_p2, %p2421_p13 }
  0x43   :  { %2431 = shalt.err (!%p2428_p3)
}
  0x44   :  { %50 = dma.hbm_to_vmem [thread:$0]  %s2853_s2, 256, %s2569_s28, [#allocation6], %s2486_s9, %s2486_s9, %s2487_s10  }
  0x45   :  { %s2492_s23 = smov [#allocation10]   ;;  %s2432_s29 = scalar_lea.hbm %s2855_s4, 1024 }
  0x46   :  { %s68_s25 = sshll.u32 %s2492_s23, 4  ;;  %p2433_p4 = scmp.ne.s32.totalorder %s2855_s4, %s2432_s29  ;;  %s69_s25 = int_to_ptr.vmem [resolvable:$true] %s68_s25 }
  0x47   :  { %p2436_p5 = scmp.lt.u32.totalorder %s2432_s29, %s2855_s4 }
  0x49   :  { %p2438_p6 = pnand %p2436_p5, %p2433_p4 }
  0x4b   :  { %2441 = shalt.err (!%p2438_p6)
}
  0x4c   :  { %s2442_s12 = scalar_lea.vmem %s69_s25, 1024  ;;  %p2447_p8 = scmp.lt.s32.totalorder %s69_s25, %s69_s25 }
  0x4d   :  { %p2443_p7 = scmp.ne.s32.totalorder %s69_s25, %s2442_s12  ;;  %p2448_p9 = scmp.lt.s32.totalorder %s2442_s12, %s2442_s12 }
  0x4f   :  { %p2449_p10 = por %p2448_p9, %p2447_p8 }
  0x51   :  { %p2450_p11 = pnand %p2449_p10, %p2443_p7 }
  0x53   :  { %2453 = shalt.err (!%p2450_p11)
}
  0x54   :  { %74 = dma.hbm_to_vmem [thread:$0]  %s2855_s4, 1024, %s69_s25, [#allocation9], %s2486_s9, %s2486_s9, %s2487_s10  }
  0x55   :  { %2476 = dma.done.wait [#allocation3], 128  }
  0x56   :  { %2477 = vsyncadd [#allocation3], 4294967168 }
  0x57   :  { %2478 = dma.done.wait [#allocation6], 512  }
  0x58   :  { %2479 = vsyncadd [#allocation6], 4294966784 }
  0x59   :  { %2480 = dma.done.wait [#allocation9], 4096  }
  0x5a   :  { %2481 = vsyncadd [#allocation9], 4294963200  ;;  %v2493_v0 = vmov 0.0   ;;  %vm2494_vm0 = vmmov 0   ;;  %v2267_v1 = vld [vmem:[#allocation8 + $0x4] ss:$12 sps:$4 sm:$0xff]  }
  0x5b   :  { %2031 = vmatprep.subr.bf16.mxu0 %v2493_v0  ;;  %2047 = vmatprep.mubr.msk.bf16.mxu0 %vm2494_vm0, %v2493_v0  ;;  %v2268_v2 = vld [vmem:[#allocation8 + $0x1c] ss:$12 sps:$4 sm:$0xff]   ;;  %v2269_v3 = vld [vmem:[#allocation8] ss:$12 sps:$4 sm:$0xff]   ;;  %v2271_v5 = vld [vmem:[#allocation8 + $0x18] ss:$12 sps:$4 sm:$0xff]  }
  0x5c   :  { %2051 = vmatprep.subr.bf16.mxu1 %v2267_v1  ;;  %v2270_v4 = vld [vmem:[#allocation8 + $0x34] ss:$12 sps:$4 sm:$0xff]   ;;  %2032 = vmatpush3.bf16.msra.mxu0 %v2269_v3  ;;  %v2272_v6 = vld [vmem:[#allocation8 + $0x4c] ss:$12 sps:$4 sm:$0xff]   ;;  %v2273_v7 = vld [vmem:[#allocation8 + $0x30] ss:$12 sps:$4 sm:$0xff]  }
  0x5d   :  { %2052 = vmatpush3.bf16.msra.mxu1 %v2267_v1  ;;  %2033 = vmatprep.subr.bf16.mxu0 %v2493_v0  ;;  %v2274_v8 = vld [vmem:[#allocation8 + $0x64] ss:$12 sps:$4 sm:$0xff]   ;;  %v2275_v9 = vld [vmem:[#allocation8 + $0x48] ss:$12 sps:$4 sm:$0xff]   ;;  %v2277_v12 = vld [vmem:[#allocation8 + $0x60] ss:$12 sps:$4 sm:$0xff]  }
  0x5e   :  { %2053 = vmatprep.subr.bf16.mxu1 %v2268_v2  ;;  %v2281_v10 = vld [vmem:[#allocation5] sm:$0xff]   ;;  %v2276_v11 = vld [vmem:[#allocation8 + $0x7c] ss:$12 sps:$4 sm:$0xff]   ;;  %v2280_v15 = vld [vmem:[#allocation8 + $0xac] ss:$12 sps:$4 sm:$0xff]   ;;  %vm491_vm1 = vcmask 261120  }
  0x5f   :  { %2067 = vmatprep.mubr.bf16.mxu1 %v2281_v10  ;;  %v2278_v13 = vld [vmem:[#allocation8 + $0x94] ss:$12 sps:$4 sm:$0xff]   ;;  %v2279_v14 = vld [vmem:[#allocation8 + $0x78] ss:$12 sps:$4 sm:$0xff]   ;;  %v2282_v16 = vld [vmem:[#allocation8 + $0x90] ss:$12 sps:$4 sm:$0xff]  }
  0x60   :  { %2034 = vmatpush3.bf16.msra.mxu0 %v2271_v5  ;;  %v2284_v17 = vld [vmem:[#allocation8 + $0xa8] ss:$12 sps:$4 sm:$0xff]   ;;  %v2285_v19 = vld [vmem:[#allocation2] sm:$0xff]   ;;  %s2495_s24 = smov 96   ;;  %v2287_v41 = vld [vmem:[#allocation8 + $0x20] ss:$12 sps:$4 sm:$0xff]  }
  0x61   :  { %2054 = vmatpush3.bf16.msra.mxu1 %v2268_v2  ;;  %2035 = vmatprep.subr.bf16.mxu0 %v2493_v0  ;;  %v2283_v18 = vld [vmem:[#allocation5 + $0x8] sm:$0xff]   ;;  %v1883_v20 = vld [vmem:[%s2856_s5 + $0x1] ss:$0 sm:$0xff]  ;;  %v1873_v21 = vld [vmem:[%s2856_s5] ss:$0 sm:$0xff]  ;;  %vm538_vm2 = vcmask 130048  }
  0x62   :  { %2055 = vmatprep.subr.bf16.mxu1 %v2270_v4  ;;  %v2286_v40 = vld [vmem:[#allocation8 + $0x8] ss:$12 sps:$4 sm:$0xff]   ;;  %v2288_v43 = vld [vmem:[#allocation8 + $0x38] ss:$12 sps:$4 sm:$0xff]   ;;  %v2289_v44 = vld [vmem:[#allocation8 + $0x50] ss:$12 sps:$4 sm:$0xff]  }
  0x63   :  { %v2294_v42 = vld [vmem:[#allocation7] sm:$0xff]   ;;  %v2291_v46 = vld [vmem:[#allocation8 + $0x80] ss:$12 sps:$4 sm:$0xff]   ;;  %v2292_v47 = vld [vmem:[#allocation8 + $0x98] ss:$12 sps:$4 sm:$0xff]   ;;  %s2496_s16 = smov 32  }
  0x64   :  { %2036 = vmatpush3.bf16.msra.mxu0 %v2273_v7  ;;  %v2290_v45 = vld [vmem:[#allocation8 + $0x68] ss:$12 sps:$4 sm:$0xff]   ;;  %v2293_v48 = vld [vmem:[#allocation8 + $0xb0] ss:$12 sps:$4 sm:$0xff]   ;;  %v1894_v55 = vld [vmem:[%s2856_s5 + $0x2] ss:$0 sm:$0xff] }
  0x65   :  { %2056 = vmatpush3.bf16.msra.mxu1 %v2270_v4  ;;  %2037 = vmatprep.subr.bf16.mxu0 %v2493_v0  ;;  %v2295_v49 = vld [vmem:[#allocation7 + $0x8] sm:$0xff]  }
  0x66   :  { %2057 = vmatprep.subr.bf16.mxu1 %v2272_v6 }
  0x68   :  { %2038 = vmatpush3.bf16.msra.mxu0 %v2275_v9 }
  0x69   :  { %2058 = vmatpush3.bf16.msra.mxu1 %v2272_v6  ;;  %2039 = vmatprep.subr.bf16.mxu0 %v2493_v0 }
  0x6a   :  { %2059 = vmatprep.subr.bf16.mxu1 %v2274_v8 }
  0x6c   :  { %2040 = vmatpush3.bf16.msra.mxu0 %v2277_v12 }
  0x6d   :  { %2060 = vmatpush3.bf16.msra.mxu1 %v2274_v8  ;;  %2041 = vmatprep.subr.bf16.mxu0 %v2493_v0 }
  0x6e   :  { %2061 = vmatprep.subr.bf16.mxu1 %v2276_v11 }
  0x70   :  { %2042 = vmatpush3.bf16.msra.mxu0 %v2279_v14 }
  0x71   :  { %2062 = vmatpush3.bf16.msra.mxu1 %v2276_v11  ;;  %2043 = vmatprep.subr.bf16.mxu0 %v2493_v0 }
  0x72   :  { %2063 = vmatprep.subr.bf16.mxu1 %v2278_v13 }
  0x74   :  { %2044 = vmatpush3.bf16.msra.mxu0 %v2282_v16 }
  0x75   :  { %2064 = vmatpush3.bf16.msra.mxu1 %v2278_v13  ;;  %2045 = vmatprep.subr.bf16.mxu0 %v2493_v0 }
  0x76   :  { %2065 = vmatprep.subr.bf16.mxu1 %v2280_v15 }
  0x78   :  { %2046 = vmatpush3.bf16.msra.mxu0 %v2284_v17 }
  0x79   :  { %2066 = vmatpush3.bf16.msra.mxu1 %v2280_v15  ;;  %2071 = vmatprep.subr.bf16.mxu0 %v2286_v40 }
  0x7a   :  { %2091 = vmatprep.subr.bf16.mxu1 %v2493_v0 }
  0x7b   :  { %2048 = vmatmul.mubr.bf16.vlgmr.msra.gmra.mrb[0].mxu0 %v2285_v19 }
  0x7c   :  { %2068 = vmatmul.mubr.bf16.vlgmr.msra.gmra.mrb[0].mxu1 %v2283_v18  ;;  %2072 = vmatpush3.bf16.msra.mxu0 %v2286_v40  ;;  %v2297_v40 = vld [vmem:[#allocation10 + $0x8] sm:$0xff]  }
  0x7d   :  { %2093 = vmatprep.mubr.msk.bf16.mxu1 %vm2494_vm0, %v2493_v0  ;;  %2073 = vmatprep.subr.bf16.mxu0 %v2287_v41 }
  0x7e   :  { %2087 = vmatprep.mubr.bf16.mxu0 %v2294_v42 }
  0x80   :  { %2074 = vmatpush3.bf16.msra.mxu0 %v2287_v41 }
  0x81   :  { %2075 = vmatprep.subr.bf16.mxu0 %v2288_v43 }
  0x84   :  { %2076 = vmatpush3.bf16.msra.mxu0 %v2288_v43 }
  0x85   :  { %2077 = vmatprep.subr.bf16.mxu0 %v2289_v44 }
  0x88   :  { %2078 = vmatpush3.bf16.msra.mxu0 %v2289_v44 }
  0x89   :  { %2079 = vmatprep.subr.bf16.mxu0 %v2290_v45 }
  0x8c   :  { %2080 = vmatpush3.bf16.msra.mxu0 %v2290_v45 }
  0x8d   :  { %2081 = vmatprep.subr.bf16.mxu0 %v2291_v46 }
  0x90   :  { %2082 = vmatpush3.bf16.msra.mxu0 %v2291_v46 }
  0x91   :  { %2083 = vmatprep.subr.bf16.mxu0 %v2292_v47 }
  0x94   :  { %2084 = vmatpush3.bf16.msra.mxu0 %v2292_v47 }
  0x95   :  { %2085 = vmatprep.subr.bf16.mxu0 %v2293_v48 }
  0x98   :  { %2086 = vmatpush3.bf16.msra.mxu0 %v2293_v48 }
  0x99   :  { %2115 = vmatprep.subr.bf16.mxu0 %v2493_v0 }
  0x9b   :  { %2088 = vmatmul.mubr.bf16.vlgmr.msra.gmra.mrb[4].mxu0 %v2295_v49 }
  0x9c   :  { %2119 = vmatprep.mubr.msk.bf16.mxu0 %vm2494_vm0, %v2493_v0 }
 0x14e   :  { %v206_v25 = vpop.f32.mrb[0].mxu0 }
 0x14f   :  { %v2069_v22 = vpop.f32.mrb[0].mxu1  ;;  %v207_v27 = vadd.f32 %v1873_v21, %v206_v25  ;;  %v2049_v28 = vpop.f32.mrb[1].mxu0 }
 0x150   :  { %v344_v23 = vadd.f32 %v2069_v22, %v1883_v20  ;;  %v335_v24 = vpop.f32.mrb[1].mxu1  ;;  %v209_v31 = vpop.f32.mrb[2].mxu0 }
 0x151   :  { %v2070_v26 = vpop.f32.mrb[2].mxu1  ;;  %v336_v32 = vadd.f32 %v1883_v20, %v335_v24  ;;  %v210_v34 = vadd.f32 %v1873_v21, %v209_v31  ;;  %v2050_v35 = vpop.f32.mrb[3].mxu0  ;;  %v2299_v31 = vld [vmem:[#allocation10 + $0x18] sm:$0xff]  }
 0x152   :  { %v347_v29 = vadd.f32 %v2070_v26, %v1883_v20  ;;  %v338_v30 = vpop.f32.mrb[3].mxu1  ;;  %v2296_v35 = vld [vmem:[#allocation10] sm:$0xff]  }
 0x153   :  { %v339_v33 = vadd.f32 %v1883_v20, %v338_v30  ;;  %v2644_v38 = vpack.c.bf16 %v210_v34, %v207_v27  ;;  %v2298_v30 = vld [vmem:[#allocation10 + $0x10] sm:$0xff]  }
 0x154   :  { %v2640_v36 = vpack.c.bf16 %v347_v29, %v344_v23  ;;  %2116 = vmatpush3.bf16.msra.mxu0 %v2298_v30 }
 0x155   :  { %v2642_v37 = vpack.c.bf16 %v339_v33, %v336_v32  ;;  %2117 = vmatprep.subr.bf16.mxu0 %v2493_v0 }
 0x157   :  { %604 = vrot.lane.b32.xlu1 %v2642_v37, %s2495_s24  ;;  %v496_v39 = vsel %vm491_vm1, %v2642_v37, 0 }
 0x158   :  { %2092 = vmatpush3.bf16.xpose.msra.mxu1 %v496_v39  ;;  %2118 = vmatpush3.bf16.msra.mxu0 %v2299_v31 }
 0x159   :  { %2097 = vmatprep.subr.bf16.mxu1 %v2493_v0  ;;  %2131 = vmatprep.subr.bf16.mxu0 %v2493_v0 }
 0x15b   :  { %601 = vrot.lane.b32.xlu1 %v2644_v38, %s2495_s24 }
 0x15f   :  { %2094 = vmatmul.mubr.msk.bf16.vlgmr.msra.gmra.mrb[4].mxu1 %vm491_vm1, %v2644_v38 }
 0x160   :  { %2099 = vmatprep.mubr.msk.bf16.mxu1 %vm2494_vm0, %v2493_v0 }
 0x16e   :  { %v2089_v56 = vpop.f32.mrb[4].mxu0 }
 0x16f   :  { %v482_v57 = vadd.f32 %v2089_v56, %v1894_v55  ;;  %v473_v58 = vpop.f32.mrb[5].mxu0 }
 0x170   :  { %v2090_v59 = vpop.f32.mrb[6].mxu0  ;;  %v474_v4 = vadd.f32 %v1894_v55, %v473_v58 }
 0x171   :  { %v485_v60 = vadd.f32 %v2090_v59, %v1894_v55  ;;  %v476_v5 = vpop.f32.mrb[7].mxu0 }
 0x172   :  { %v477_v6 = vadd.f32 %v1894_v55, %v476_v5 }
 0x173   :  { %v2664_v61 = vpack.c.bf16 %v485_v60, %v482_v57 }
 0x174   :  { %v2667_v7 = vpack.c.bf16 %v477_v6, %v474_v4 }
 0x176   :  { %2098 = vmatpush3.bf16.msra.mxu1 %v2667_v7 }
 0x177   :  { %2103 = vmatprep.subr.bf16.mxu1 %v2493_v0 }
 0x1c9   :  { %v605_v11 = vpop.permute.xlu1 %604 }
 0x1ca   :  { %v610_v13 = vsel %vm491_vm1, %v605_v11, 0 }
 0x1cd   :  { %v602_v14 = vpop.permute.xlu1 %601 }
 0x232   :  { %v532_v50 = vpop.f32.mrb[4].mxu1 }
 0x233   :  { %v2095_v51 = vpop.f32.mrb[5].mxu1  ;;  %v539_v52 = vsel %vm538_vm2, %v532_v50, -inf }
 0x234   :  { %540 = vmax.xlane.f32.xlu0 %v539_v52  ;;  %v535_v53 = vpop.f32.mrb[6].mxu1 }
 0x235   :  { %v2096_v54 = vpop.f32.mrb[7].mxu1 }
 0x2c1   :  { %v541_v62 = vpop.xlane.xlu0 %540 }
 0x2c2   :  { %v542_v63 = vsub.f32 %v532_v50, %v541_v62 }
 0x2c4   :  { %v543_v1 = vmul.f32 1.442695, %v542_v63 }
 0x2c6   :  { %2312 = vpow2.f32 %v543_v1 }
 0x2d0   :  { %v2313_v2 = vpop.eup %2312 }
 0x2d1   :  { %v545_v3 = vsel %vm538_vm2, %v2313_v2, 0.0 }
 0x2d2   :  { %546 = vadd.xlane.f32.xlu0 %v545_v3 }
 0x35f   :  { %v547_v8 = vpop.xlane.xlu0 %546 }
 0x360   :  { %2314 = vrcp.f32 %v547_v8 }
 0x36a   :  { %v2315_v9 = vpop.eup %2314 }
 0x36b   :  { %v550_v10 = vmul.f32 %v2315_v9, %v2313_v2  ;;  %v2300_v9 = vld [vmem:[#allocation10 + $0x20] sm:$0xff]  }
 0x36d   :  { %v551_v12 = vpack.c.bf16 %v550_v10, %v550_v10 }
 0x36f   :  { %2100 = vmatmul.mubr.msk.bf16.vlgmr.msra.gmra.mrb[8].mxu1 %vm538_vm2, %v551_v12 }
 0x370   :  { %2104 = vmatpush3.bf16.xpose.msra.mxu1 %v610_v13  ;;  %2105 = vmatprep.mubr.msk.bf16.mxu1 %vm2494_vm0, %v2493_v0 }
 0x371   :  { %2109 = vmatprep.subr.bf16.mxu1 %v2493_v0 }
 0x377   :  { %2106 = vmatmul.mubr.msk.bf16.vlgmr.msra.gmra.mrb[12].mxu1 %vm491_vm1, %v602_v14 }
 0x378   :  { %2111 = vmatprep.mubr.msk.bf16.mxu1 %vm2494_vm0, %v2493_v0 }
 0x442   :  { %v589_v15 = vpop.f32.mrb[8].mxu1 }
 0x443   :  { %v2101_v16 = vpop.f32.mrb[9].mxu1  ;;  %v595_v41 = vpack.c.bf16 %v589_v15, %v589_v15 }
 0x444   :  { %v592_v17 = vpop.f32.mrb[10].mxu1  ;;  %v2301_v16 = vld [vmem:[#allocation10 + $0x28] sm:$0xff]  }
 0x445   :  { %v2102_v18 = vpop.f32.mrb[11].mxu1 }
 0x44a   :  { %v646_v19 = vpop.f32.mrb[12].mxu1 }
 0x44b   :  { %v2107_v20 = vpop.f32.mrb[13].mxu1  ;;  %v652_v21 = vsel %vm538_vm2, %v646_v19, -inf }
 0x44c   :  { %653 = vmax.xlane.f32.xlu0 %v652_v21  ;;  %v649_v22 = vpop.f32.mrb[14].mxu1 }
 0x44d   :  { %v2108_v23 = vpop.f32.mrb[15].mxu1 }
 0x462   :  { %666 = vrot.lane.b32.xlu0 %v2667_v7, %s2495_s24 }
 0x466   :  { %830 = vrot.lane.b32.xlu0 %v2642_v37, %s2486_s9 }
 0x46a   :  { %828 = vrot.lane.b32.xlu0 %v2644_v38, %s2486_s9 }
 0x4d9   :  { %v654_v24 = vpop.xlane.xlu0 %653 }
 0x4da   :  { %v655_v25 = vsub.f32 %v646_v19, %v654_v24 }
 0x4dc   :  { %v656_v26 = vmul.f32 1.442695, %v655_v25 }
 0x4dd   :  { %v667_v27 = vpop.permute.xlu0 %666 }
 0x4de   :  { %2316 = vpow2.f32 %v656_v26  ;;  %2110 = vmatpush3.bf16.msra.mxu1 %v667_v27  ;;  %v2736_v27 = vrot.slane %v2644_v38, 4 }
 0x4df   :  { %2123 = vmatprep.subr.bf16.mxu1 %v2493_v0 }
 0x4e1   :  { %v831_v43 = vpop.permute.xlu0 %830 }
 0x4e2   :  { %v836_v48 = vsel %vm491_vm1, %v831_v43, 0 }
 0x4e5   :  { %v829_v52 = vpop.permute.xlu0 %828 }
 0x4e8   :  { %v2317_v28 = vpop.eup %2316 }
 0x4e9   :  { %v658_v29 = vsel %vm538_vm2, %v2317_v28, 0.0 }
 0x4ea   :  { %659 = vadd.xlane.f32.xlu1 %v658_v29 }
 0x4fb   :  { %891 = vrot.lane.b32.xlu1 %v2667_v7, %s2486_s9 }
 0x577   :  { %v660_v32 = vpop.xlane.xlu1 %659 }
 0x578   :  { %2318 = vrcp.f32 %v660_v32 }
 0x57b   :  { %v892_v42 = vpop.permute.xlu1 %891 }
 0x582   :  { %v2319_v33 = vpop.eup %2318 }
 0x583   :  { %v663_v34 = vmul.f32 %v2319_v33, %v2317_v28  ;;  %v2302_v33 = vld [vmem:[#allocation10 + $0x30] sm:$0xff]  }
 0x585   :  { %v664_v39 = vpack.c.bf16 %v663_v34, %v663_v34 }
 0x587   :  { %2112 = vmatmul.mubr.msk.bf16.vlgmr.msra.gmra.mrb[16].mxu1 %vm538_vm2, %v664_v39  ;;  %v2303_v39 = vld [vmem:[#allocation10 + $0x38] sm:$0xff]  }
 0x588   :  { %2124 = vmatpush3.bf16.msra.mxu1 %v2296_v35  ;;  %2127 = vmatprep.mubr.msk.bf16.mxu1 %vm2494_vm0, %v2493_v0 }
 0x589   :  { %2125 = vmatprep.subr.bf16.mxu1 %v2493_v0 }
 0x58c   :  { %2126 = vmatpush3.bf16.msra.mxu1 %v2297_v40 }
 0x58d   :  { %2137 = vmatprep.subr.bf16.mxu1 %v2493_v0 }
 0x58f   :  { %2128 = vmatmul.mubr.msk.bf16.vlgmr.msra.gmra.mrb[20].mxu1 %vm491_vm1, %v595_v41 }
 0x590   :  { %2138 = vmatpush3.bf16.msra.mxu1 %v892_v42  ;;  %2139 = vmatprep.mubr.msk.bf16.mxu1 %vm2494_vm0, %v2493_v0 }
 0x591   :  { %2151 = vmatprep.subr.bf16.mxu1 %v2493_v0 }
 0x65a   :  { %v706_v44 = vpop.f32.mrb[16].mxu1 }
 0x65b   :  { %v712_v45 = vpack.c.bf16 %v706_v44, %v706_v44  ;;  %v2113_v46 = vpop.f32.mrb[17].mxu1 }
 0x65c   :  { %v709_v47 = vpop.f32.mrb[18].mxu1  ;;  %v1183_v46 = vsel %vm491_vm1, %v2640_v36, 0 }
 0x65d   :  { %v2114_v49 = vpop.f32.mrb[19].mxu1  ;;  %2120 = vmatmul.mubr.msk.bf16.vlgmr.msra.gmra.mrb[8].mxu0 %vm491_vm1, %v712_v45 }
 0x65e   :  { %2132 = vmatpush3.bf16.xpose.msra.mxu0 %v836_v48  ;;  %2133 = vmatprep.mubr.msk.bf16.mxu0 %vm2494_vm0, %v2493_v0 }
 0x65f   :  { %2143 = vmatprep.subr.bf16.mxu0 %v2493_v0 }
 0x662   :  { %v822_v50 = vpop.f32.mrb[20].mxu1 }
 0x663   :  { %v2129_v51 = vpop.f32.mrb[21].mxu1 }
 0x664   :  { %v825_v53 = vpop.f32.mrb[22].mxu1 }
 0x665   :  { %v2130_v54 = vpop.f32.mrb[23].mxu1  ;;  %2134 = vmatmul.mubr.msk.bf16.vlgmr.msra.gmra.mrb[12].mxu0 %vm491_vm1, %v829_v52 }
 0x666   :  { %2147 = vmatprep.mubr.msk.bf16.mxu0 %vm2494_vm0, %v2493_v0  ;;  %2144 = vmatpush3.bf16.msra.mxu0 %v2300_v9 }
 0x667   :  { %2145 = vmatprep.subr.bf16.mxu0 %v2493_v0 }
 0x66a   :  { %2146 = vmatpush3.bf16.msra.mxu0 %v2301_v16 }
 0x66b   :  { %2157 = vmatprep.subr.bf16.mxu0 %v2493_v0 }
 0x730   :  { %v767_v55 = vpop.f32.mrb[8].mxu0 }
 0x731   :  { %v2709_v56 = vadd.f32 %v822_v50, %v767_v55  ;;  %v2121_v57 = vpop.f32.mrb[9].mxu0 }
 0x732   :  { %v770_v58 = vpop.f32.mrb[10].mxu0 }
 0x733   :  { %v2122_v59 = vpop.f32.mrb[11].mxu0 }
 0x738   :  { %v872_v60 = vpop.f32.mrb[12].mxu0 }
 0x739   :  { %v2135_v62 = vpop.f32.mrb[13].mxu0  ;;  %v878_v63 = vsel %vm538_vm2, %v872_v60, -inf }
 0x73a   :  { %879 = vmax.xlane.f32.xlu0 %v878_v63  ;;  %v875_v1 = vpop.f32.mrb[14].mxu0 }
 0x73b   :  { %v2136_v2 = vpop.f32.mrb[15].mxu0 }
 0x7c7   :  { %v880_v3 = vpop.xlane.xlu0 %879 }
 0x7c8   :  { %v881_v4 = vsub.f32 %v872_v60, %v880_v3 }
 0x7ca   :  { %v882_v5 = vmul.f32 1.442695, %v881_v4 }
 0x7cc   :  { %2320 = vpow2.f32 %v882_v5 }
 0x7d6   :  { %v2321_v6 = vpop.eup %2320 }
 0x7d7   :  { %v884_v8 = vsel %vm538_vm2, %v2321_v6, 0.0 }
 0x7d8   :  { %885 = vadd.xlane.f32.xlu1 %v884_v8 }
 0x7e9   :  { %1001 = vrot.lane.b32.xlu1 %v2642_v37, %s2496_s16 }
 0x7ed   :  { %999 = vrot.lane.b32.xlu1 %v2644_v38, %s2496_s16 }
 0x865   :  { %v886_v10 = vpop.xlane.xlu1 %885 }
 0x866   :  { %2322 = vrcp.f32 %v886_v10 }
 0x869   :  { %v1002_v13 = vpop.permute.xlu1 %1001 }
 0x86a   :  { %v1007_v15 = vsel %vm491_vm1, %v1002_v13, 0 }
 0x86d   :  { %v1000_v37 = vpop.permute.xlu1 %999 }
 0x870   :  { %v2323_v11 = vpop.eup %2322 }
 0x871   :  { %v889_v12 = vmul.f32 %v2323_v11, %v2321_v6 }
 0x873   :  { %v890_v14 = vpack.c.bf16 %v889_v12, %v889_v12 }
 0x875   :  { %2140 = vmatmul.mubr.msk.bf16.vlgmr.msra.gmra.mrb[24].mxu1 %vm538_vm2, %v890_v14  ;;  %v2305_v14 = vld [vmem:[#allocation10 + $0x10] sm:$0xff]  }
 0x876   :  { %2152 = vmatpush3.bf16.xpose.msra.mxu1 %v1007_v15  ;;  %2153 = vmatprep.mubr.msk.bf16.mxu1 %vm2494_vm0, %v2493_v0  ;;  %v2781_v15 = vld [vmem:[%s2856_s5 + $0x3] ss:$0 sm:$0xff]  ;;  %s2497_s5 = smov [#allocation11]  }
 0x877   :  { %2163 = vmatprep.subr.bf16.mxu1 %v2493_v0 }
 0x87d   :  { %2154 = vmatmul.mubr.msk.bf16.vlgmr.msra.gmra.mrb[28].mxu1 %vm491_vm1, %v1000_v37 }
 0x87e   :  { %2167 = vmatprep.mubr.msk.bf16.mxu1 %vm2494_vm0, %v2493_v0  ;;  %2164 = vmatpush3.bf16.msra.mxu1 %v2302_v33 }
 0x87f   :  { %2165 = vmatprep.subr.bf16.mxu1 %v2493_v0 }
 0x882   :  { %2166 = vmatpush3.bf16.msra.mxu1 %v2303_v39 }
 0x883   :  { %2177 = vmatprep.subr.bf16.mxu1 %v2493_v0 }
 0x948   :  { %v931_v17 = vpop.f32.mrb[24].mxu1 }
 0x949   :  { %v937_v18 = vpack.c.bf16 %v931_v17, %v931_v17  ;;  %v2141_v19 = vpop.f32.mrb[25].mxu1 }
 0x94a   :  { %v934_v20 = vpop.f32.mrb[26].mxu1 }
 0x94b   :  { %v2142_v21 = vpop.f32.mrb[27].mxu1  ;;  %2148 = vmatmul.mubr.msk.bf16.vlgmr.msra.gmra.mrb[16].mxu0 %vm491_vm1, %v937_v18 }
 0x94c   :  { %2159 = vmatprep.mubr.msk.bf16.mxu0 %vm2494_vm0, %v2493_v0 }
 0x950   :  { %v1043_v22 = vpop.f32.mrb[28].mxu1 }
 0x951   :  { %v2155_v23 = vpop.f32.mrb[29].mxu1  ;;  %v1049_v24 = vsel %vm538_vm2, %v1043_v22, -inf }
 0x952   :  { %1050 = vmax.xlane.f32.xlu0 %v1049_v24  ;;  %v1046_v25 = vpop.f32.mrb[30].mxu1 }
 0x953   :  { %v2156_v26 = vpop.f32.mrb[31].mxu1 }
 0x968   :  { %1062 = vrot.lane.b32.xlu0 %v2667_v7, %s2496_s16 }
 0x96c   :  { %1289 = vrot.lane.b32.xlu0 %v2640_v36, %s2495_s24 }
 0x970   :  { %1286 = vrot.lane.b32.xlu0 %v2736_v27, %s2495_s24 }
 0x9df   :  { %v1051_v28 = vpop.xlane.xlu0 %1050 }
 0x9e0   :  { %v1052_v29 = vsub.f32 %v1043_v22, %v1051_v28 }
 0x9e2   :  { %v1053_v30 = vmul.f32 1.442695, %v1052_v29 }
 0x9e3   :  { %v1063_v31 = vpop.permute.xlu0 %1062 }
 0x9e4   :  { %2324 = vpow2.f32 %v1053_v30  ;;  %2158 = vmatpush3.bf16.msra.mxu0 %v1063_v31  ;;  %v2304_v30 = vld [vmem:[#allocation10] sm:$0xff]  }
 0x9e5   :  { %2171 = vmatprep.subr.bf16.mxu0 %v2493_v0 }
 0x9e7   :  { %v1290_v47 = vpop.permute.xlu0 %1289 }
 0x9e8   :  { %v1295_v48 = vsel %vm491_vm1, %v1290_v47, 0 }
 0x9eb   :  { %v1287_v49 = vpop.permute.xlu0 %1286 }
 0x9ee   :  { %v2325_v32 = vpop.eup %2324 }
 0x9ef   :  { %v1055_v7 = vsel %vm538_vm2, %v2325_v32, 0.0 }
 0x9f0   :  { %1056 = vadd.xlane.f32.xlu1 %v1055_v7  ;;  %v2307_v7 = vld [vmem:[#allocation10 + $0x18] sm:$0xff]  }
 0xa1e   :  { %v992_v34 = vpop.f32.mrb[16].mxu0 }
 0xa1f   :  { %v2743_v38 = vadd.f32 %v992_v34, %v2709_v56  ;;  %v2149_v35 = vpop.f32.mrb[17].mxu0 }
 0xa20   :  { %v995_v40 = vpop.f32.mrb[18].mxu0 }
 0xa21   :  { %v2150_v41 = vpop.f32.mrb[19].mxu0 }
 0xa7d   :  { %v1057_v42 = vpop.xlane.xlu1 %1056 }
 0xa7e   :  { %2326 = vrcp.f32 %v1057_v42 }
 0xa88   :  { %v2327_v43 = vpop.eup %2326 }
 0xa89   :  { %v1060_v44 = vmul.f32 %v2327_v43, %v2325_v32  ;;  %v2306_v32 = vld [vmem:[#allocation10 + $0x8] sm:$0xff]  }
 0xa8b   :  { %v1061_v45 = vpack.c.bf16 %v1060_v44, %v1060_v44 }
 0xa8d   :  { %2160 = vmatmul.mubr.msk.bf16.vlgmr.msra.gmra.mrb[20].mxu0 %vm538_vm2, %v1061_v45 }
 0xa8e   :  { %2172 = vmatpush3.bf16.xpose.msra.mxu0 %v1183_v46  ;;  %2173 = vmatprep.mubr.msk.bf16.mxu0 %vm2494_vm0, %v2493_v0 }
 0xa8f   :  { %2183 = vmatprep.subr.bf16.mxu0 %v2493_v0 }
 0xa95   :  { %2174 = vmatmul.mubr.msk.bf16.vlgmr.msra.gmra.mrb[24].mxu0 %vm491_vm1, %v2736_v27 }
 0xa96   :  { %2184 = vmatpush3.bf16.xpose.msra.mxu0 %v1295_v48  ;;  %2185 = vmatprep.mubr.msk.bf16.mxu0 %vm2494_vm0, %v2493_v0 }
 0xa97   :  { %2195 = vmatprep.subr.bf16.mxu0 %v2493_v0 }
 0xa9d   :  { %2186 = vmatmul.mubr.msk.bf16.vlgmr.msra.gmra.mrb[28].mxu0 %vm491_vm1, %v1287_v49 }
 0xa9e   :  { %2199 = vmatprep.mubr.msk.bf16.mxu0 %vm2494_vm0, %v2493_v0  ;;  %2196 = vmatpush3.bf16.msra.mxu0 %v2305_v14 }
 0xa9f   :  { %2197 = vmatprep.subr.bf16.mxu0 %v2493_v0 }
 0xaa2   :  { %2198 = vmatpush3.bf16.msra.mxu0 %v2307_v7 }
 0xaa3   :  { %2211 = vmatprep.subr.bf16.mxu0 %v2493_v0 }
 0xb60   :  { %v1102_v50 = vpop.f32.mrb[20].mxu0 }
 0xb61   :  { %v1108_v51 = vpack.c.bf16 %v1102_v50, %v1102_v50  ;;  %v2161_v52 = vpop.f32.mrb[21].mxu0 }
 0xb62   :  { %v1105_v53 = vpop.f32.mrb[22].mxu0 }
 0xb63   :  { %v2162_v54 = vpop.f32.mrb[23].mxu0  ;;  %2168 = vmatmul.mubr.msk.bf16.vlgmr.msra.gmra.mrb[32].mxu1 %vm491_vm1, %v1108_v51 }
 0xb64   :  { %2178 = vmatpush3.bf16.msra.mxu1 %v2664_v61  ;;  %2179 = vmatprep.mubr.msk.bf16.mxu1 %vm2494_vm0, %v2493_v0 }
 0xb65   :  { %2189 = vmatprep.subr.bf16.mxu1 %v2493_v0 }
 0xb68   :  { %v1219_v55 = vpop.f32.mrb[24].mxu0 }
 0xb69   :  { %v2175_v56 = vpop.f32.mrb[25].mxu0  ;;  %v1225_v57 = vsel %vm538_vm2, %v1219_v55, -inf }
 0xb6a   :  { %1226 = vmax.xlane.f32.xlu0 %v1225_v57  ;;  %v1222_v58 = vpop.f32.mrb[26].mxu0 }
 0xb6b   :  { %v2176_v59 = vpop.f32.mrb[27].mxu0 }
 0xb70   :  { %v1331_v60 = vpop.f32.mrb[28].mxu0 }
 0xb71   :  { %v2187_v62 = vpop.f32.mrb[29].mxu0  ;;  %v1337_v63 = vsel %vm538_vm2, %v1331_v60, -inf }
 0xb72   :  { %1338 = vmax.xlane.f32.xlu1 %v1337_v63  ;;  %v1334_v1 = vpop.f32.mrb[30].mxu0 }
 0xb73   :  { %v2188_v2 = vpop.f32.mrb[31].mxu0 }
 0xb80   :  { %1514 = vrot.lane.b32.xlu0 %v2640_v36, %s2486_s9 }
 0xbf7   :  { %v1227_v3 = vpop.xlane.xlu0 %1226 }
 0xbf8   :  { %v1228_v4 = vsub.f32 %v1219_v55, %v1227_v3 }
 0xbfa   :  { %v1229_v5 = vmul.f32 1.442695, %v1228_v4 }
 0xbfb   :  { %v1515_v40 = vpop.permute.xlu0 %1514 }
 0xbfc   :  { %2328 = vpow2.f32 %v1229_v5  ;;  %v1520_v45 = vsel %vm491_vm1, %v1515_v40, 0 }
 0xbff   :  { %v1339_v6 = vpop.xlane.xlu1 %1338 }
 0xc00   :  { %v1340_v8 = vsub.f32 %v1331_v60, %v1339_v6  ;;  %v2308_v6 = vld [vmem:[#allocation10 + $0x20] sm:$0xff]  }
 0xc02   :  { %v1341_v9 = vmul.f32 1.442695, %v1340_v8 }
 0xc04   :  { %2330 = vpow2.f32 %v1341_v9 }
 0xc06   :  { %v2329_v10 = vpop.eup %2328 }
 0xc07   :  { %v1231_v11 = vsel %vm538_vm2, %v2329_v10, 0.0 }
 0xc08   :  { %1232 = vadd.xlane.f32.xlu1 %v1231_v11 }
 0xc0e   :  { %v2331_v12 = vpop.eup %2330 }
 0xc0f   :  { %v1343_v13 = vsel %vm538_vm2, %v2331_v12, 0.0 }
 0xc10   :  { %1344 = vadd.xlane.f32.xlu1 %v1343_v13  ;;  %v2309_v13 = vld [vmem:[#allocation10 + $0x28] sm:$0xff]  }
 0xc21   :  { %1351 = vrot.lane.b32.xlu1 %v2664_v61, %s2495_s24 }
 0xc25   :  { %1512 = vrot.lane.b32.xlu1 %v2736_v27, %s2486_s9 }
 0xc36   :  { %v1163_v37 = vpop.f32.mrb[32].mxu1 }
 0xc37   :  { %v1169_v16 = vadd.f32 %v1163_v37, %v2743_v38  ;;  %v2169_v17 = vpop.f32.mrb[33].mxu1 }
 0xc38   :  { %v1166_v18 = vpop.f32.mrb[34].mxu1 }
 0xc39   :  { %v1176_v19 = vadd.f32 %v2781_v15, %v1169_v16  ;;  %v2170_v20 = vpop.f32.mrb[35].mxu1 }
 0xc3b   :  { %1177 = vst [vmem:[#allocation11] sm:$0xff] %v1176_v19 }
 0xc95   :  { %v1233_v21 = vpop.xlane.xlu1 %1232 }
 0xc96   :  { %2332 = vrcp.f32 %v1233_v21 }
 0xc9d   :  { %v1345_v22 = vpop.xlane.xlu1 %1344 }
 0xc9e   :  { %2334 = vrcp.f32 %v1345_v22 }
 0xca0   :  { %v2333_v23 = vpop.eup %2332 }
 0xca1   :  { %v1236_v24 = vmul.f32 %v2333_v23, %v2329_v10  ;;  %v1352_v26 = vpop.permute.xlu1 %1351 }
 0xca3   :  { %v1237_v25 = vpack.c.bf16 %v1236_v24, %v1236_v24 }
 0xca5   :  { %2180 = vmatmul.mubr.msk.bf16.vlgmr.msra.gmra.mrb[36].mxu1 %vm538_vm2, %v1237_v25  ;;  %v1513_v47 = vpop.permute.xlu1 %1512 }
 0xca6   :  { %2190 = vmatpush3.bf16.msra.mxu1 %v1352_v26  ;;  %2191 = vmatprep.mubr.msk.bf16.mxu1 %vm2494_vm0, %v2493_v0 }
 0xca7   :  { %2203 = vmatprep.subr.bf16.mxu1 %v2493_v0 }
 0xca8   :  { %v2335_v28 = vpop.eup %2334 }
 0xca9   :  { %v1348_v29 = vmul.f32 %v2335_v28, %v2331_v12 }
 0xcab   :  { %v1349_v31 = vpack.c.bf16 %v1348_v29, %v1348_v29 }
 0xcad   :  { %2192 = vmatmul.mubr.msk.bf16.vlgmr.msra.gmra.mrb[40].mxu1 %vm538_vm2, %v1349_v31  ;;  %v2310_v31 = vld [vmem:[#allocation10 + $0x30] sm:$0xff]  }
 0xcae   :  { %2204 = vmatpush3.bf16.msra.mxu1 %v2304_v30  ;;  %2207 = vmatprep.mubr.msk.bf16.mxu1 %vm2494_vm0, %v2493_v0 }
 0xcaf   :  { %2205 = vmatprep.subr.bf16.mxu1 %v2493_v0 }
 0xcb2   :  { %2206 = vmatpush3.bf16.msra.mxu1 %v2306_v32 }
 0xcb3   :  { %2217 = vmatprep.subr.bf16.mxu1 %v2493_v0 }
 0xd78   :  { %v1275_v33 = vpop.f32.mrb[36].mxu1 }
 0xd79   :  { %v1281_v34 = vpack.c.bf16 %v1275_v33, %v1275_v33  ;;  %v2181_v38 = vpop.f32.mrb[37].mxu1 }
 0xd7a   :  { %v1278_v35 = vpop.f32.mrb[38].mxu1 }
 0xd7b   :  { %v2182_v39 = vpop.f32.mrb[39].mxu1  ;;  %2208 = vmatmul.mubr.msk.bf16.vlgmr.msra.gmra.mrb[44].mxu1 %vm491_vm1, %v1281_v34 }
 0xd7c   :  { %2219 = vmatprep.mubr.msk.bf16.mxu1 %vm2494_vm0, %v2493_v0 }
 0xd80   :  { %v1391_v41 = vpop.f32.mrb[40].mxu1 }
 0xd81   :  { %v1397_v42 = vpack.c.bf16 %v1391_v41, %v1391_v41  ;;  %v2193_v43 = vpop.f32.mrb[41].mxu1  ;;  %v2311_v41 = vld [vmem:[#allocation10 + $0x38] sm:$0xff]  }
 0xd82   :  { %v1394_v44 = vpop.f32.mrb[42].mxu1 }
 0xd83   :  { %v2194_v46 = vpop.f32.mrb[43].mxu1  ;;  %2200 = vmatmul.mubr.msk.bf16.vlgmr.msra.gmra.mrb[32].mxu0 %vm491_vm1, %v1397_v42 }
 0xd84   :  { %2212 = vmatpush3.bf16.xpose.msra.mxu0 %v1520_v45  ;;  %2213 = vmatprep.mubr.msk.bf16.mxu0 %vm2494_vm0, %v2493_v0 }
 0xd85   :  { %2223 = vmatprep.subr.bf16.mxu0 %v2493_v0 }
 0xd8b   :  { %2214 = vmatmul.mubr.msk.bf16.vlgmr.msra.gmra.mrb[36].mxu0 %vm491_vm1, %v1513_v47 }
 0xd8c   :  { %2227 = vmatprep.mubr.msk.bf16.mxu0 %vm2494_vm0, %v2493_v0  ;;  %2224 = vmatpush3.bf16.msra.mxu0 %v2308_v6 }
 0xd8d   :  { %2225 = vmatprep.subr.bf16.mxu0 %v2493_v0 }
 0xd90   :  { %2226 = vmatpush3.bf16.msra.mxu0 %v2309_v13 }
 0xd91   :  { %2237 = vmatprep.subr.bf16.mxu0 %v2493_v0 }
 0xe4e   :  { %v1506_v48 = vpop.f32.mrb[44].mxu1 }
 0xe4f   :  { %v2209_v49 = vpop.f32.mrb[45].mxu1 }
 0xe50   :  { %v1509_v50 = vpop.f32.mrb[46].mxu1 }
 0xe51   :  { %v2210_v51 = vpop.f32.mrb[47].mxu1 }
 0xe56   :  { %v1451_v52 = vpop.f32.mrb[32].mxu0 }
 0xe57   :  { %v2806_v53 = vadd.f32 %v1506_v48, %v1451_v52  ;;  %v2201_v54 = vpop.f32.mrb[33].mxu0 }
 0xe58   :  { %v1454_v55 = vpop.f32.mrb[34].mxu0 }
 0xe59   :  { %v2202_v56 = vpop.f32.mrb[35].mxu0 }
 0xe5e   :  { %v1556_v57 = vpop.f32.mrb[36].mxu0 }
 0xe5f   :  { %v2215_v58 = vpop.f32.mrb[37].mxu0  ;;  %v1562_v59 = vsel %vm538_vm2, %v1556_v57, -inf }
 0xe60   :  { %1563 = vmax.xlane.f32.xlu1 %v1562_v59  ;;  %v1559_v60 = vpop.f32.mrb[38].mxu0 }
 0xe61   :  { %v2216_v62 = vpop.f32.mrb[39].mxu0 }
 0xe71   :  { %1575 = vrot.lane.b32.xlu1 %v2664_v61, %s2486_s9  ;;  %s1859_s9 = sshll.u32 %s2497_s5, 4  ;;  %s1860_s9 = int_to_ptr.vmem [resolvable:$true] %s1859_s9 }
 0xe72   :  { %s2454_s19 = scalar_lea.vmem %s1860_s9, 256  ;;  %p2459_p13 = scmp.lt.s32.totalorder %s1860_s9, %s1860_s9 }
 0xe73   :  { %p2455_p12 = scmp.ne.s32.totalorder %s1860_s9, %s2454_s19  ;;  %p2460_p0 = scmp.lt.s32.totalorder %s2454_s19, %s2454_s19 }
 0xe75   :  { %1682 = vrot.lane.b32.xlu1 %v2736_v27, %s2496_s16  ;;  %p2461_p1 = por %p2460_p0, %p2459_p13 }
 0xe77   :  { %p2462_p2 = pnand %p2461_p1, %p2455_p12 }
 0xeed   :  { %v1564_v63 = vpop.xlane.xlu1 %1563 }
 0xeee   :  { %v1565_v1 = vsub.f32 %v1556_v57, %v1564_v63 }
 0xef0   :  { %v1566_v2 = vmul.f32 1.442695, %v1565_v1 }
 0xef1   :  { %v1576_v3 = vpop.permute.xlu1 %1575 }
 0xef2   :  { %2336 = vpow2.f32 %v1566_v2  ;;  %2218 = vmatpush3.bf16.msra.mxu1 %v1576_v3 }
 0xef3   :  { %2231 = vmatprep.subr.bf16.mxu1 %v2493_v0 }
 0xefc   :  { %v2337_v4 = vpop.eup %2336 }
 0xefd   :  { %v1568_v5 = vsel %vm538_vm2, %v2337_v4, 0.0 }
 0xefe   :  { %1569 = vadd.xlane.f32.xlu0 %v1568_v5 }
 0xf14   :  { %1684 = vrot.lane.b32.xlu0 %v2640_v36, %s2496_s16  ;;  %v1683_v36 = vpop.permute.xlu1 %1682 }
 0xf8b   :  { %v1570_v27 = vpop.xlane.xlu0 %1569 }
 0xf8c   :  { %2338 = vrcp.f32 %v1570_v27 }
 0xf8f   :  { %v1685_v10 = vpop.permute.xlu0 %1684 }
 0xf90   :  { %v1690_v12 = vsel %vm491_vm1, %v1685_v10, 0 }
 0xf96   :  { %v2339_v8 = vpop.eup %2338 }
 0xf97   :  { %v1573_v9 = vmul.f32 %v2339_v8, %v2337_v4 }
 0xf99   :  { %v1574_v11 = vpack.c.bf16 %v1573_v9, %v1573_v9 }
 0xf9b   :  { %2220 = vmatmul.mubr.msk.bf16.vlgmr.msra.gmra.mrb[48].mxu1 %vm538_vm2, %v1574_v11 }
 0xf9c   :  { %2232 = vmatpush3.bf16.xpose.msra.mxu1 %v1690_v12  ;;  %2233 = vmatprep.mubr.msk.bf16.mxu1 %vm2494_vm0, %v2493_v0 }
 0xf9d   :  { %2243 = vmatprep.subr.bf16.mxu1 %v2493_v0 }
 0xfa3   :  { %2234 = vmatmul.mubr.msk.bf16.vlgmr.msra.gmra.mrb[52].mxu1 %vm491_vm1, %v1683_v36 }
 0xfa4   :  { %2247 = vmatprep.mubr.msk.bf16.mxu1 %vm2494_vm0, %v2493_v0  ;;  %2244 = vmatpush3.bf16.msra.mxu1 %v2310_v31 }
 0xfa5   :  { %2245 = vmatprep.subr.bf16.mxu1 %v2493_v0 }
 0xfa8   :  { %2246 = vmatpush3.bf16.msra.mxu1 %v2311_v41 }
0x106e   :  { %v1615_v14 = vpop.f32.mrb[48].mxu1 }
0x106f   :  { %v1621_v37 = vpack.c.bf16 %v1615_v14, %v1615_v14  ;;  %v2221_v16 = vpop.f32.mrb[49].mxu1 }
0x1070   :  { %v1618_v17 = vpop.f32.mrb[50].mxu1 }
0x1071   :  { %v2222_v18 = vpop.f32.mrb[51].mxu1  ;;  %2228 = vmatmul.mubr.msk.bf16.vlgmr.msra.gmra.mrb[40].mxu0 %vm491_vm1, %v1621_v37 }
0x1072   :  { %2239 = vmatprep.mubr.msk.bf16.mxu0 %vm2494_vm0, %v2493_v0 }
0x1076   :  { %v1726_v19 = vpop.f32.mrb[52].mxu1 }
0x1077   :  { %v2235_v20 = vpop.f32.mrb[53].mxu1  ;;  %v1732_v21 = vsel %vm538_vm2, %v1726_v19, -inf }
0x1078   :  { %1733 = vmax.xlane.f32.xlu1 %v1732_v21  ;;  %v1729_v22 = vpop.f32.mrb[54].mxu1 }
0x1079   :  { %v2236_v23 = vpop.f32.mrb[55].mxu1 }
0x1089   :  { %1745 = vrot.lane.b32.xlu1 %v2664_v61, %s2496_s16 }
0x1105   :  { %v1734_v24 = vpop.xlane.xlu1 %1733 }
0x1106   :  { %v1735_v25 = vsub.f32 %v1726_v19, %v1734_v24 }
0x1108   :  { %v1736_v26 = vmul.f32 1.442695, %v1735_v25 }
0x1109   :  { %v1746_v28 = vpop.permute.xlu1 %1745 }
0x110a   :  { %2340 = vpow2.f32 %v1736_v26  ;;  %2238 = vmatpush3.bf16.msra.mxu0 %v1746_v28 }
0x1114   :  { %v2341_v29 = vpop.eup %2340 }
0x1115   :  { %v1738_v30 = vsel %vm538_vm2, %v2341_v29, 0.0 }
0x1116   :  { %1739 = vadd.xlane.f32.xlu0 %v1738_v30 }
0x1144   :  { %v1675_v32 = vpop.f32.mrb[40].mxu0 }
0x1145   :  { %v1681_v7 = vadd.f32 %v1675_v32, %v2806_v53  ;;  %v2229_v33 = vpop.f32.mrb[41].mxu0 }
0x1146   :  { %v1678_v34 = vpop.f32.mrb[42].mxu0 }
0x1147   :  { %v2230_v61 = vpop.f32.mrb[43].mxu0 }
0x11a3   :  { %v1740_v38 = vpop.xlane.xlu0 %1739 }
0x11a4   :  { %2342 = vrcp.f32 %v1740_v38 }
0x11ae   :  { %v2343_v35 = vpop.eup %2342 }
0x11af   :  { %v1743_v39 = vmul.f32 %v2343_v35, %v2341_v29 }
0x11b1   :  { %v1744_v40 = vpack.c.bf16 %v1743_v39, %v1743_v39 }
0x11b3   :  { %2240 = vmatmul.mubr.msk.bf16.vlgmr.msra.gmra.mrb[44].mxu0 %vm538_vm2, %v1744_v40 }
0x1286   :  { %v1785_v42 = vpop.f32.mrb[44].mxu0 }
0x1287   :  { %v1791_v43 = vpack.c.bf16 %v1785_v42, %v1785_v42  ;;  %v2241_v44 = vpop.f32.mrb[45].mxu0 }
0x1288   :  { %v1788_v45 = vpop.f32.mrb[46].mxu0 }
0x1289   :  { %v2242_v0 = vpop.f32.mrb[47].mxu0  ;;  %2248 = vmatmul.mubr.msk.bf16.vlgmr.msra.gmra.mrb[56].mxu1 %vm491_vm1, %v1791_v43 }
0x135c   :  { %v1845_v46 = vpop.f32.mrb[56].mxu1 }
0x135d   :  { %v1851_v47 = vadd.f32 %v1845_v46, %v1681_v7  ;;  %v2249_v48 = vpop.f32.mrb[57].mxu1 }
0x135e   :  { %v1848_v49 = vpop.f32.mrb[58].mxu1 }
0x135f   :  { %v1852_v50 = vadd.f32 %v2781_v15, %v1851_v47  ;;  %v2250_v51 = vpop.f32.mrb[59].mxu1 }
0x1361   :  { %1853 = vst [vmem:[#allocation11 + $0x8] sm:$0xff] %v1852_v50 }
0x1362   :  { %2465 = shalt.err (!%p2462_p2)
}
0x1363   :  { %s2466_s21 = scalar_lea.hbm %s2857_s6, 256 }
0x1364   :  { %p2467_p3 = scmp.ne.s32.totalorder %s2857_s6, %s2466_s21  ;;  %p2470_p4 = scmp.lt.u32.totalorder %s2466_s21, %s2857_s6 }
0x1366   :  { %p2472_p5 = pnand %p2470_p4, %p2467_p3 }
0x1368   :  { %2475 = shalt.err (!%p2472_p5)
}
0x1369   :  { %s2498_s26 = smov 128   ;;  %s2499_s27 = smov 8  }
0x136a   :  { %1865 = dma.vmem_to_hbm [thread:$0]  %s1860_s9, 256, %s2857_s6, [#allocation4], %s2498_s26, %s2498_s26, %s2499_s27  }
0x136b   :  { %2482 = dma.done.wait [#allocation4], 256  }
0x136c   :  { %2483 = vsyncadd [#allocation4], 4294967040 }
0x136d   :  { %1869 = vsyncpa [#allocation3], 1 }
0x136e   :  { %1870 = vsyncpa [#allocation6], 1 }
0x136f   :  { %1871 = vsyncpa [#allocation9], 1 }
0x1370   :  { %1872 = vsyncpa [#allocation4], 1 }

</bundles_post_ra>
